<compile_context>
chip_gen: v6e
topology: v6e:2x2x1
jax: 0.10.0
libtpu: 0.0.40
codegen_flags: <defaults>
</compile_context>

<pallas_src>
import jax
import jax.numpy as jnp
from jax.experimental import pallas as pl
from jax.experimental.pallas import tpu as pltpu


def dkvmn_kernel(q_ref, qa_ref, ifw_ref,
                 wq_ref, wea_ref, bea_ref, mv0_ref,
                 wrr_ref, br_ref, wp_ref, bp_ref,
                 logits_ref):
    """One grid step == one block of B_blk batch samples."""
    Bb, T, _ = q_ref.shape
    M, V = mv0_ref.shape
    N = Bb * T
    f32 = jnp.float32

    q2 = q_ref[...].reshape(N, -1)       # (N, Dq)
    qa2 = qa_ref[...].reshape(N, -1)     # (N, Dqa)
    gate = ifw_ref[...].reshape(N, 1)    # (N, 1)  1.0 where q_data >= 1

    # ---- Fused, state-independent GEMM #1: [attention scores | read-head q] ----
    qcat = jnp.dot(q2, wq_ref[...], preferred_element_type=f32)       # (N, M+F)
    s = qcat[:, :M]                                                   # (N, M)
    hq = qcat[:, M:]                                                  # (N, F)

    # DKVMN.attention: softmax over memory slots (exact divide for parity).
    s = s - jnp.max(s, axis=-1, keepdims=True)
    e = jnp.exp(s)
    w2 = e / jnp.sum(e, axis=-1, keepdims=True)                       # (N, M)

    # ---- Fused, state-independent GEMM #2: [erase | add] projections ----------
    # TODO(synk): DKVMN.write source not provided; if_memory_write is
    # interpreted as a per-(sample, step) gate on whether the value memory
    # updates: gate*new_mv + (1-gate)*mv == mv*(1 - w*(gate*erase)) + w*(gate*add).
    ea = jnp.dot(qa2, wea_ref[...], preferred_element_type=f32) + bea_ref[...]
    erase = (1.0 / (1.0 + jnp.exp(-ea[:, :V]))) * gate                # (N, V)
    add = jnp.tanh(ea[:, V:]) * gate                                  # (N, V)

    # ---- Sequential value-memory recurrence, vectorized over the batch block --
    # Per-sample attention laid out as (M, T) so the per-step access is a cheap
    # lane slice (M stays on sublanes, matching mv's layout).
    w_bmt = jnp.stack([w2[b * T:(b + 1) * T, :].T for b in range(Bb)], axis=0)  # (Bb, M, T)
    erase3 = erase.reshape(Bb, T, V)                                  # T=8 => tile-friendly split
    add3 = add.reshape(Bb, T, V)

    mv = jnp.broadcast_to(mv0_ref[...], (Bb, M, V))                   # carried in vregs
    reads = []
    for t in range(T):                                                # T static: fully unrolled
        # One materialized broadcast per step, reused by read and write.
        w_bc = jnp.broadcast_to(w_bmt[:, :, t:t + 1], (Bb, M, V))
        # DKVMN.read uses the memory *before* this step's write.
        reads.append(jnp.sum(w_bc * mv, axis=1, keepdims=True))       # (Bb, 1, V)
        mv = mv * (1.0 - w_bc * erase3[:, t:t + 1, :]) + w_bc * add3[:, t:t + 1, :]
    reads2 = jnp.concatenate(reads, axis=1).reshape(N, V)             # (N, V)

    # ---- Deferred prediction head over all (sample, step) pairs at once -------
    h = jnp.tanh(jnp.dot(reads2, wrr_ref[...], preferred_element_type=f32)
                 + hq + br_ref[...])                                  # (N, F)
    # (F -> 1) head as VPU multiply + lane reduce (no 1-lane-wide MXU result).
    x_col = jnp.sum(h * wp_ref[...], axis=-1, keepdims=True) + bp_ref[...]   # (N, 1)
    logits_ref[0] = x_col.T                                           # (1, N) lane-dense


def _full_spec(arr):
    nd = arr.ndim
    return pl.BlockSpec(arr.shape, lambda b, _nd=nd: (0,) * _nd)


@jax.jit
def dkvmn_forward_pallas(q_btd, qa_btd, ifw_bt1, tgt_bt1,
                         mk, mv0, we, be, wa, ba, wr, br, wp, bp):
    B, T, Dq = q_btd.shape
    Dqa = qa_btd.shape[-1]
    M, V = mv0.shape

    # --- Batch blocking: fill the MXU / amortize per-step overhead, but keep
    #     the parallel grid axis >= 2 when possible (v7x has 2 TensorCores).
    #     B_blk <= 16 keeps the register-carried recurrence well inside 64 vregs.
    B_blk = min(16, max(1, B // 2)) if B >= 2 else 1
    n_blocks = pl.cdiv(B, B_blk)
    B_pad = n_blocks * B_blk
    if B_pad != B:
        pad = ((0, B_pad - B), (0, 0), (0, 0))
        q_btd = jnp.pad(q_btd, pad)
        qa_btd = jnp.pad(qa_btd, pad)
        ifw_bt1 = jnp.pad(ifw_bt1, pad)
    N_blk = B_blk * T

    # --- Weight prep outside the kernel: pre-transpose, split the read-head
    #     weight, and fuse same-LHS GEMM weights.
    wq = jnp.concatenate([mk.T, wr[:, V:].T], axis=1)     # (Dq, M + F): scores | q-proj
    wea = jnp.concatenate([we.T, wa.T], axis=1)           # (Dqa, 2V):   erase | add
    bea = jnp.concatenate([be, ba], axis=1)               # (1, 2V)
    wrr = wr[:, :V].T                                     # (V, F)

    weights = (wq, wea, bea, mv0, wrr, br, wp, bp)

    logits = pl.pallas_call(
        dkvmn_kernel,
        out_shape=jax.ShapeDtypeStruct((n_blocks, 1, N_blk), jnp.float32),
        grid=(n_blocks,),
        in_specs=[
            pl.BlockSpec((B_blk, T, Dq), lambda b: (b, 0, 0)),
            pl.BlockSpec((B_blk, T, Dqa), lambda b: (b, 0, 0)),
            pl.BlockSpec((B_blk, T, 1), lambda b: (b, 0, 0)),
        ] + [_full_spec(w) for w in weights],
        out_specs=pl.BlockSpec((1, 1, N_blk), lambda b: (b, 0, 0)),
        compiler_params=pltpu.CompilerParams(
            dimension_semantics=("parallel",)),
    )(q_btd, qa_btd, ifw_bt1, *weights)

    # pred ordered (b*T + t), matching torch's pred.view(-1, 1).
    pred_1d = logits.reshape(B_pad * T, 1)[:B * T]

    # Masked BCE-with-logits mean (torch masked_select + BCEWithLogits) in XLA.
    x = pred_1d
    tgt = tgt_bt1.reshape(B * T, 1)
    mask = tgt >= 0.0
    z = (tgt == 1.0).astype(jnp.float32)       # binary=False path: target.eq(1).float()
    bce = jnp.maximum(x, 0.0) - x * z + jnp.log1p(jnp.exp(-jnp.abs(x)))
    denom = jnp.maximum(jnp.sum(mask.astype(jnp.float32)), 1.0)
    loss = jnp.sum(jnp.where(mask, bce, 0.0)) / denom
    return loss, pred_1d


if __name__ == "__main__":
    key = jax.random.PRNGKey(0)
    n_question = 20
    B, T = 8, 8
    M = 16                       # memory_size
    q_embed_dim = 32             # == memory_key_state_dim, final_fc_dim (required by the model)
    qa_embed_dim = 32            # == memory_value_state_dim
    key_dim = 32
    value_dim = 32
    final_fc_dim = 32
    reslen = 12                  # binary=False

    ks = jax.random.split(key, 12)

    def kaiming(k, shape, fan_in):
        return jax.random.normal(k, shape, dtype=jnp.float32) * jnp.sqrt(2.0 / fan_in)

    # Embedding tables (padding_idx=0 -> zero row).
    q_table = kaiming(ks[0], (n_question + 1, q_embed_dim), q_embed_dim).at[0].set(0.0)
    qa_table = kaiming(ks[1], (reslen * (n_question + 1), qa_embed_dim), qa_embed_dim).at[0].set(0.0)

    # DKVMN memory matrices.
    mk = kaiming(ks[2], (M, key_dim), key_dim)               # init_memory_key
    mv0 = kaiming(ks[3], (M, value_dim), value_dim)          # init_memory_value

    # Write-head erase/add linears (value_dim <- qa_embed_dim).
    we = kaiming(ks[4], (value_dim, qa_embed_dim), qa_embed_dim)
    be = jnp.zeros((1, value_dim), jnp.float32)
    wa = kaiming(ks[5], (value_dim, qa_embed_dim), qa_embed_dim)
    ba = jnp.zeros((1, value_dim), jnp.float32)

    # read_embed_linear and predict_linear (init_params: kaiming W, zero bias).
    wr = kaiming(ks[6], (final_fc_dim, value_dim + q_embed_dim), value_dim + q_embed_dim)
    br = jnp.zeros((1, final_fc_dim), jnp.float32)
    wp = kaiming(ks[7], (1, final_fc_dim), final_fc_dim)
    bp = jnp.zeros((1, 1), jnp.float32)

    # Inputs: question ids (0 = padding), answers, qa ids, targets.
    q_data = jax.random.randint(ks[8], (B, T), 0, n_question + 1)
    ans = jax.random.randint(ks[9], (B, T), 0, 2)
    qa_data = jnp.where(q_data > 0, q_data + ans * (n_question + 1), 0)
    target = jnp.where(q_data > 0, ans.astype(jnp.float32), -1.0).reshape(B * T, 1)

    # Glue: embedding gathers (nn.Embedding) stay in XLA.
    q_embed = jnp.take(q_table, q_data, axis=0).astype(jnp.float32)      # (B, T, Dq)
    qa_embed = jnp.take(qa_table, qa_data, axis=0).astype(jnp.float32)   # (B, T, Dqa)
    ifw_bt1 = (q_data >= 1).astype(jnp.float32)[:, :, None]              # (B, T, 1)
    tgt_bt1 = target.reshape(B, T, 1)                                    # (B, T, 1)

    loss, pred_1d = dkvmn_forward_pallas(
        q_embed, qa_embed, ifw_bt1, tgt_bt1,
        mk, mv0, we, be, wa, ba, wr, br, wp, bp)

    # torch.masked_select equivalents (dynamic shapes -> outside the kernel/jit).
    mask = (target >= 0.0).reshape(-1)
    filtered_pred = pred_1d.reshape(-1)[mask]
    filtered_target = (target.reshape(-1)[mask] == 1.0).astype(jnp.float32)
    probs = jax.nn.sigmoid(filtered_pred)

    jax.block_until_ready((loss, probs, filtered_target))
    print("KERNEL_OK")
</pallas_src>

<mosaic_0001>
module attributes {stable_mosaic.version = 11 : i64} {
  func.func @dkvmn_kernel(%arg0: i32, %arg1: memref<4x8x32xf32, #tpu.memory_space<vmem>>, %arg2: memref<4x8x32xf32, #tpu.memory_space<vmem>>, %arg3: memref<4x8x1xf32, #tpu.memory_space<vmem>>, %arg4: memref<32x48xf32, #tpu.memory_space<vmem>>, %arg5: memref<32x64xf32, #tpu.memory_space<vmem>>, %arg6: memref<1x64xf32, #tpu.memory_space<vmem>>, %arg7: memref<16x32xf32, #tpu.memory_space<vmem>>, %arg8: memref<32x32xf32, #tpu.memory_space<vmem>>, %arg9: memref<1x32xf32, #tpu.memory_space<vmem>>, %arg10: memref<1x32xf32, #tpu.memory_space<vmem>>, %arg11: memref<1x1xf32, #tpu.memory_space<vmem>>, %arg12: memref<1x1x32xf32, #tpu.memory_space<vmem>>) attributes {dimension_semantics = [#tpu.dimension_semantics<parallel>], iteration_bounds = array<i64: 2>, scalar_prefetch = 0 : i64, scratch_operands = 0 : i64, tpu.core_type = #tpu.core_type<tc>, window_params = [{transform_indices = @transform_0, window_bounds = array<i64: 4, 8, 32>}, {transform_indices = @transform_1, window_bounds = array<i64: 4, 8, 32>}, {transform_indices = @transform_2, window_bounds = array<i64: 4, 8, 1>}, {pipeline_mode = #tpu.pipeline_mode<synchronous>, transform_indices = @transform_3, window_bounds = array<i64: 32, 48>}, {pipeline_mode = #tpu.pipeline_mode<synchronous>, transform_indices = @transform_4, window_bounds = array<i64: 32, 64>}, {pipeline_mode = #tpu.pipeline_mode<synchronous>, transform_indices = @transform_5, window_bounds = array<i64: 1, 64>}, {pipeline_mode = #tpu.pipeline_mode<synchronous>, transform_indices = @transform_6, window_bounds = array<i64: 16, 32>}, {pipeline_mode = #tpu.pipeline_mode<synchronous>, transform_indices = @transform_7, window_bounds = array<i64: 32, 32>}, {pipeline_mode = #tpu.pipeline_mode<synchronous>, transform_indices = @transform_8, window_bounds = array<i64: 1, 32>}, {pipeline_mode = #tpu.pipeline_mode<synchronous>, transform_indices = @transform_9, window_bounds = array<i64: 1, 32>}, {pipeline_mode = #tpu.pipeline_mode<synchronous>, transform_indices = @transform_10, window_bounds = array<i64: 1, 1>}, {transform_indices = @transform_11, window_bounds = array<i64: 1, 1, 32>}]} {
    %c0 = arith.constant 0 : index
    %c0_0 = arith.constant 0 : index
    %c0_1 = arith.constant 0 : index
    %0 = vector.load %arg1[%c0, %c0_0, %c0_1] : memref<4x8x32xf32, #tpu.memory_space<vmem>>, vector<4x8x32xf32>
    %1 = vector.shape_cast %0 : vector<4x8x32xf32> to vector<32x32xf32>
    %c0_2 = arith.constant 0 : index
    %c0_3 = arith.constant 0 : index
    %c0_4 = arith.constant 0 : index
    %2 = vector.load %arg2[%c0_2, %c0_3, %c0_4] : memref<4x8x32xf32, #tpu.memory_space<vmem>>, vector<4x8x32xf32>
    %3 = vector.shape_cast %2 : vector<4x8x32xf32> to vector<32x32xf32>
    %c0_5 = arith.constant 0 : index
    %c0_6 = arith.constant 0 : index
    %c0_7 = arith.constant 0 : index
    %4 = vector.load %arg3[%c0_5, %c0_6, %c0_7] : memref<4x8x1xf32, #tpu.memory_space<vmem>>, vector<4x8x1xf32>
    %5 = vector.shape_cast %4 : vector<4x8x1xf32> to vector<32x1xf32>
    %c0_8 = arith.constant 0 : index
    %c0_9 = arith.constant 0 : index
    %6 = vector.load %arg4[%c0_8, %c0_9] : memref<32x48xf32, #tpu.memory_space<vmem>>, vector<32x48xf32>
    %cst = arith.constant dense<0.000000e+00> : vector<32x48xf32>
    %7 = tpu.matmul %1, %6, %cst {dimension_numbers = #tpu.dot_dimension_numbers<[1], [0], [0], [1], [0, 0, 1, 1], [], []>} : vector<32x32xf32>, vector<32x48xf32>, vector<32x48xf32> -> vector<32x48xf32>
    %8 = vector.extract_strided_slice %7 {offsets = [0, 0], sizes = [32, 16], strides = [1, 1]} : vector<32x48xf32> to vector<32x16xf32>
    %9 = vector.extract_strided_slice %7 {offsets = [0, 16], sizes = [32, 32], strides = [1, 1]} : vector<32x48xf32> to vector<32x32xf32>
    %cst_10 = arith.constant dense<0xFF800000> : vector<32xf32>
    %10 = vector.multi_reduction <maximumf>, %8, %cst_10 [1] : vector<32x16xf32> to vector<32xf32>
    %11 = vector.shape_cast %10 : vector<32xf32> to vector<32x1xf32>
    %12 = vector.broadcast %11 : vector<32x1xf32> to vector<32x16xf32>
    %13 = arith.subf %8, %12 : vector<32x16xf32>
    %14 = math.exp %13 : vector<32x16xf32>
    %cst_11 = arith.constant dense<0.000000e+00> : vector<32xf32>
    %15 = vector.multi_reduction <add>, %14, %cst_11 [1] : vector<32x16xf32> to vector<32xf32>
    %16 = vector.shape_cast %15 : vector<32xf32> to vector<32x1xf32>
    %17 = vector.broadcast %16 : vector<32x1xf32> to vector<32x16xf32>
    %18 = arith.divf %14, %17 : vector<32x16xf32>
    %c0_12 = arith.constant 0 : index
    %c0_13 = arith.constant 0 : index
    %19 = vector.load %arg5[%c0_12, %c0_13] : memref<32x64xf32, #tpu.memory_space<vmem>>, vector<32x64xf32>
    %cst_14 = arith.constant dense<0.000000e+00> : vector<32x64xf32>
    %20 = tpu.matmul %3, %19, %cst_14 {dimension_numbers = #tpu.dot_dimension_numbers<[1], [0], [0], [1], [0, 0, 1, 1], [], []>} : vector<32x32xf32>, vector<32x64xf32>, vector<32x64xf32> -> vector<32x64xf32>
    %c0_15 = arith.constant 0 : index
    %c0_16 = arith.constant 0 : index
    %21 = vector.load %arg6[%c0_15, %c0_16] : memref<1x64xf32, #tpu.memory_space<vmem>>, vector<1x64xf32>
    %22 = vector.broadcast %21 : vector<1x64xf32> to vector<32x64xf32>
    %23 = arith.addf %20, %22 : vector<32x64xf32>
    %24 = vector.extract_strided_slice %23 {offsets = [0, 0], sizes = [32, 32], strides = [1, 1]} : vector<32x64xf32> to vector<32x32xf32>
    %cst_17 = arith.constant 0.000000e+00 : f32
    %25 = vector.broadcast %cst_17 : f32 to vector<32x32xf32>
    %26 = arith.subf %25, %24 : vector<32x32xf32>
    %27 = math.exp %26 : vector<32x32xf32>
    %cst_18 = arith.constant 1.000000e+00 : f32
    %28 = vector.broadcast %cst_18 : f32 to vector<32x32xf32>
    %29 = arith.addf %28, %27 : vector<32x32xf32>
    %cst_19 = arith.constant 1.000000e+00 : f32
    %30 = vector.broadcast %cst_19 : f32 to vector<32x32xf32>
    %31 = arith.divf %30, %29 : vector<32x32xf32>
    %32 = vector.broadcast %5 : vector<32x1xf32> to vector<32x32xf32>
    %33 = arith.mulf %31, %32 : vector<32x32xf32>
    %34 = vector.extract_strided_slice %23 {offsets = [0, 32], sizes = [32, 32], strides = [1, 1]} : vector<32x64xf32> to vector<32x32xf32>
    %35 = math.tanh %34 : vector<32x32xf32>
    %36 = vector.broadcast %5 : vector<32x1xf32> to vector<32x32xf32>
    %37 = arith.mulf %35, %36 : vector<32x32xf32>
    %38 = vector.extract_strided_slice %18 {offsets = [0, 0], sizes = [8, 16], strides = [1, 1]} : vector<32x16xf32> to vector<8x16xf32>
    %39 = tpu.transpose %38, [1, 0] : vector<8x16xf32> -> vector<16x8xf32>
    %40 = vector.extract_strided_slice %18 {offsets = [8, 0], sizes = [8, 16], strides = [1, 1]} : vector<32x16xf32> to vector<8x16xf32>
    %41 = tpu.transpose %40, [1, 0] : vector<8x16xf32> -> vector<16x8xf32>
    %42 = vector.extract_strided_slice %18 {offsets = [16, 0], sizes = [8, 16], strides = [1, 1]} : vector<32x16xf32> to vector<8x16xf32>
    %43 = tpu.transpose %42, [1, 0] : vector<8x16xf32> -> vector<16x8xf32>
    %44 = vector.extract_strided_slice %18 {offsets = [24, 0], sizes = [8, 16], strides = [1, 1]} : vector<32x16xf32> to vector<8x16xf32>
    %45 = tpu.transpose %44, [1, 0] : vector<8x16xf32> -> vector<16x8xf32>
    %46 = vector.shape_cast %39 : vector<16x8xf32> to vector<1x16x8xf32>
    %47 = vector.shape_cast %41 : vector<16x8xf32> to vector<1x16x8xf32>
    %48 = vector.shape_cast %43 : vector<16x8xf32> to vector<1x16x8xf32>
    %49 = vector.shape_cast %45 : vector<16x8xf32> to vector<1x16x8xf32>
    %50 = tpu.concatenate %46, %47, %48, %49 in 0 : vector<1x16x8xf32>, vector<1x16x8xf32>, vector<1x16x8xf32>, vector<1x16x8xf32> -> vector<4x16x8xf32>
    %51 = vector.shape_cast %33 : vector<32x32xf32> to vector<4x8x32xf32>
    %52 = vector.shape_cast %37 : vector<32x32xf32> to vector<4x8x32xf32>
    %c0_20 = arith.constant 0 : index
    %c0_21 = arith.constant 0 : index
    %53 = vector.load %arg7[%c0_20, %c0_21] : memref<16x32xf32, #tpu.memory_space<vmem>>, vector<16x32xf32>
    %54 = vector.shape_cast %53 : vector<16x32xf32> to vector<1x16x32xf32>
    %55 = vector.broadcast %54 : vector<1x16x32xf32> to vector<4x16x32xf32>
    %56 = vector.extract_strided_slice %50 {offsets = [0, 0, 0], sizes = [4, 16, 1], strides = [1, 1, 1]} : vector<4x16x8xf32> to vector<4x16x1xf32>
    %57 = vector.shape_cast %56 : vector<4x16x1xf32> to vector<4x16x1xf32>
    %58 = vector.broadcast %57 : vector<4x16x1xf32> to vector<4x16x32xf32>
    %59 = arith.mulf %58, %55 : vector<4x16x32xf32>
    %cst_22 = arith.constant dense<0.000000e+00> : vector<4x32xf32>
    %60 = vector.multi_reduction <add>, %59, %cst_22 [1] : vector<4x16x32xf32> to vector<4x32xf32>
    %61 = vector.shape_cast %60 : vector<4x32xf32> to vector<4x1x32xf32>
    %62 = vector.extract_strided_slice %51 {offsets = [0, 0, 0], sizes = [4, 1, 32], strides = [1, 1, 1]} : vector<4x8x32xf32> to vector<4x1x32xf32>
    %63 = vector.broadcast %62 : vector<4x1x32xf32> to vector<4x16x32xf32>
    %64 = arith.mulf %58, %63 : vector<4x16x32xf32>
    %cst_23 = arith.constant 1.000000e+00 : f32
    %65 = vector.broadcast %cst_23 : f32 to vector<4x16x32xf32>
    %66 = arith.subf %65, %64 : vector<4x16x32xf32>
    %67 = arith.mulf %55, %66 : vector<4x16x32xf32>
    %68 = vector.extract_strided_slice %52 {offsets = [0, 0, 0], sizes = [4, 1, 32], strides = [1, 1, 1]} : vector<4x8x32xf32> to vector<4x1x32xf32>
    %69 = vector.broadcast %68 : vector<4x1x32xf32> to vector<4x16x32xf32>
    %70 = arith.mulf %58, %69 : vector<4x16x32xf32>
    %71 = arith.addf %67, %70 : vector<4x16x32xf32>
    %72 = vector.extract_strided_slice %50 {offsets = [0, 0, 1], sizes = [4, 16, 1], strides = [1, 1, 1]} : vector<4x16x8xf32> to vector<4x16x1xf32>
    %73 = vector.shape_cast %72 : vector<4x16x1xf32> to vector<4x16x1xf32>
    %74 = vector.broadcast %73 : vector<4x16x1xf32> to vector<4x16x32xf32>
    %75 = arith.mulf %74, %71 : vector<4x16x32xf32>
    %cst_24 = arith.constant dense<0.000000e+00> : vector<4x32xf32>
    %76 = vector.multi_reduction <add>, %75, %cst_24 [1] : vector<4x16x32xf32> to vector<4x32xf32>
    %77 = vector.shape_cast %76 : vector<4x32xf32> to vector<4x1x32xf32>
    %78 = vector.extract_strided_slice %51 {offsets = [0, 1, 0], sizes = [4, 1, 32], strides = [1, 1, 1]} : vector<4x8x32xf32> to vector<4x1x32xf32>
    %79 = vector.broadcast %78 : vector<4x1x32xf32> to vector<4x16x32xf32>
    %80 = arith.mulf %74, %79 : vector<4x16x32xf32>
    %cst_25 = arith.constant 1.000000e+00 : f32
    %81 = vector.broadcast %cst_25 : f32 to vector<4x16x32xf32>
    %82 = arith.subf %81, %80 : vector<4x16x32xf32>
    %83 = arith.mulf %71, %82 : vector<4x16x32xf32>
    %84 = vector.extract_strided_slice %52 {offsets = [0, 1, 0], sizes = [4, 1, 32], strides = [1, 1, 1]} : vector<4x8x32xf32> to vector<4x1x32xf32>
    %85 = vector.broadcast %84 : vector<4x1x32xf32> to vector<4x16x32xf32>
    %86 = arith.mulf %74, %85 : vector<4x16x32xf32>
    %87 = arith.addf %83, %86 : vector<4x16x32xf32>
    %88 = vector.extract_strided_slice %50 {offsets = [0, 0, 2], sizes = [4, 16, 1], strides = [1, 1, 1]} : vector<4x16x8xf32> to vector<4x16x1xf32>
    %89 = vector.shape_cast %88 : vector<4x16x1xf32> to vector<4x16x1xf32>
    %90 = vector.broadcast %89 : vector<4x16x1xf32> to vector<4x16x32xf32>
    %91 = arith.mulf %90, %87 : vector<4x16x32xf32>
    %cst_26 = arith.constant dense<0.000000e+00> : vector<4x32xf32>
    %92 = vector.multi_reduction <add>, %91, %cst_26 [1] : vector<4x16x32xf32> to vector<4x32xf32>
    %93 = vector.shape_cast %92 : vector<4x32xf32> to vector<4x1x32xf32>
    %94 = vector.extract_strided_slice %51 {offsets = [0, 2, 0], sizes = [4, 1, 32], strides = [1, 1, 1]} : vector<4x8x32xf32> to vector<4x1x32xf32>
    %95 = vector.broadcast %94 : vector<4x1x32xf32> to vector<4x16x32xf32>
    %96 = arith.mulf %90, %95 : vector<4x16x32xf32>
    %cst_27 = arith.constant 1.000000e+00 : f32
    %97 = vector.broadcast %cst_27 : f32 to vector<4x16x32xf32>
    %98 = arith.subf %97, %96 : vector<4x16x32xf32>
    %99 = arith.mulf %87, %98 : vector<4x16x32xf32>
    %100 = vector.extract_strided_slice %52 {offsets = [0, 2, 0], sizes = [4, 1, 32], strides = [1, 1, 1]} : vector<4x8x32xf32> to vector<4x1x32xf32>
    %101 = vector.broadcast %100 : vector<4x1x32xf32> to vector<4x16x32xf32>
    %102 = arith.mulf %90, %101 : vector<4x16x32xf32>
    %103 = arith.addf %99, %102 : vector<4x16x32xf32>
    %104 = vector.extract_strided_slice %50 {offsets = [0, 0, 3], sizes = [4, 16, 1], strides = [1, 1, 1]} : vector<4x16x8xf32> to vector<4x16x1xf32>
    %105 = vector.shape_cast %104 : vector<4x16x1xf32> to vector<4x16x1xf32>
    %106 = vector.broadcast %105 : vector<4x16x1xf32> to vector<4x16x32xf32>
    %107 = arith.mulf %106, %103 : vector<4x16x32xf32>
    %cst_28 = arith.constant dense<0.000000e+00> : vector<4x32xf32>
    %108 = vector.multi_reduction <add>, %107, %cst_28 [1] : vector<4x16x32xf32> to vector<4x32xf32>
    %109 = vector.shape_cast %108 : vector<4x32xf32> to vector<4x1x32xf32>
    %110 = vector.extract_strided_slice %51 {offsets = [0, 3, 0], sizes = [4, 1, 32], strides = [1, 1, 1]} : vector<4x8x32xf32> to vector<4x1x32xf32>
    %111 = vector.broadcast %110 : vector<4x1x32xf32> to vector<4x16x32xf32>
    %112 = arith.mulf %106, %111 : vector<4x16x32xf32>
    %cst_29 = arith.constant 1.000000e+00 : f32
    %113 = vector.broadcast %cst_29 : f32 to vector<4x16x32xf32>
    %114 = arith.subf %113, %112 : vector<4x16x32xf32>
    %115 = arith.mulf %103, %114 : vector<4x16x32xf32>
    %116 = vector.extract_strided_slice %52 {offsets = [0, 3, 0], sizes = [4, 1, 32], strides = [1, 1, 1]} : vector<4x8x32xf32> to vector<4x1x32xf32>
    %117 = vector.broadcast %116 : vector<4x1x32xf32> to vector<4x16x32xf32>
    %118 = arith.mulf %106, %117 : vector<4x16x32xf32>
    %119 = arith.addf %115, %118 : vector<4x16x32xf32>
    %120 = vector.extract_strided_slice %50 {offsets = [0, 0, 4], sizes = [4, 16, 1], strides = [1, 1, 1]} : vector<4x16x8xf32> to vector<4x16x1xf32>
    %121 = vector.shape_cast %120 : vector<4x16x1xf32> to vector<4x16x1xf32>
    %122 = vector.broadcast %121 : vector<4x16x1xf32> to vector<4x16x32xf32>
    %123 = arith.mulf %122, %119 : vector<4x16x32xf32>
    %cst_30 = arith.constant dense<0.000000e+00> : vector<4x32xf32>
    %124 = vector.multi_reduction <add>, %123, %cst_30 [1] : vector<4x16x32xf32> to vector<4x32xf32>
    %125 = vector.shape_cast %124 : vector<4x32xf32> to vector<4x1x32xf32>
    %126 = vector.extract_strided_slice %51 {offsets = [0, 4, 0], sizes = [4, 1, 32], strides = [1, 1, 1]} : vector<4x8x32xf32> to vector<4x1x32xf32>
    %127 = vector.broadcast %126 : vector<4x1x32xf32> to vector<4x16x32xf32>
    %128 = arith.mulf %122, %127 : vector<4x16x32xf32>
    %cst_31 = arith.constant 1.000000e+00 : f32
    %129 = vector.broadcast %cst_31 : f32 to vector<4x16x32xf32>
    %130 = arith.subf %129, %128 : vector<4x16x32xf32>
    %131 = arith.mulf %119, %130 : vector<4x16x32xf32>
    %132 = vector.extract_strided_slice %52 {offsets = [0, 4, 0], sizes = [4, 1, 32], strides = [1, 1, 1]} : vector<4x8x32xf32> to vector<4x1x32xf32>
    %133 = vector.broadcast %132 : vector<4x1x32xf32> to vector<4x16x32xf32>
    %134 = arith.mulf %122, %133 : vector<4x16x32xf32>
    %135 = arith.addf %131, %134 : vector<4x16x32xf32>
    %136 = vector.extract_strided_slice %50 {offsets = [0, 0, 5], sizes = [4, 16, 1], strides = [1, 1, 1]} : vector<4x16x8xf32> to vector<4x16x1xf32>
    %137 = vector.shape_cast %136 : vector<4x16x1xf32> to vector<4x16x1xf32>
    %138 = vector.broadcast %137 : vector<4x16x1xf32> to vector<4x16x32xf32>
    %139 = arith.mulf %138, %135 : vector<4x16x32xf32>
    %cst_32 = arith.constant dense<0.000000e+00> : vector<4x32xf32>
    %140 = vector.multi_reduction <add>, %139, %cst_32 [1] : vector<4x16x32xf32> to vector<4x32xf32>
    %141 = vector.shape_cast %140 : vector<4x32xf32> to vector<4x1x32xf32>
    %142 = vector.extract_strided_slice %51 {offsets = [0, 5, 0], sizes = [4, 1, 32], strides = [1, 1, 1]} : vector<4x8x32xf32> to vector<4x1x32xf32>
    %143 = vector.broadcast %142 : vector<4x1x32xf32> to vector<4x16x32xf32>
    %144 = arith.mulf %138, %143 : vector<4x16x32xf32>
    %cst_33 = arith.constant 1.000000e+00 : f32
    %145 = vector.broadcast %cst_33 : f32 to vector<4x16x32xf32>
    %146 = arith.subf %145, %144 : vector<4x16x32xf32>
    %147 = arith.mulf %135, %146 : vector<4x16x32xf32>
    %148 = vector.extract_strided_slice %52 {offsets = [0, 5, 0], sizes = [4, 1, 32], strides = [1, 1, 1]} : vector<4x8x32xf32> to vector<4x1x32xf32>
    %149 = vector.broadcast %148 : vector<4x1x32xf32> to vector<4x16x32xf32>
    %150 = arith.mulf %138, %149 : vector<4x16x32xf32>
    %151 = arith.addf %147, %150 : vector<4x16x32xf32>
    %152 = vector.extract_strided_slice %50 {offsets = [0, 0, 6], sizes = [4, 16, 1], strides = [1, 1, 1]} : vector<4x16x8xf32> to vector<4x16x1xf32>
    %153 = vector.shape_cast %152 : vector<4x16x1xf32> to vector<4x16x1xf32>
    %154 = vector.broadcast %153 : vector<4x16x1xf32> to vector<4x16x32xf32>
    %155 = arith.mulf %154, %151 : vector<4x16x32xf32>
    %cst_34 = arith.constant dense<0.000000e+00> : vector<4x32xf32>
    %156 = vector.multi_reduction <add>, %155, %cst_34 [1] : vector<4x16x32xf32> to vector<4x32xf32>
    %157 = vector.shape_cast %156 : vector<4x32xf32> to vector<4x1x32xf32>
    %158 = vector.extract_strided_slice %51 {offsets = [0, 6, 0], sizes = [4, 1, 32], strides = [1, 1, 1]} : vector<4x8x32xf32> to vector<4x1x32xf32>
    %159 = vector.broadcast %158 : vector<4x1x32xf32> to vector<4x16x32xf32>
    %160 = arith.mulf %154, %159 : vector<4x16x32xf32>
    %cst_35 = arith.constant 1.000000e+00 : f32
    %161 = vector.broadcast %cst_35 : f32 to vector<4x16x32xf32>
    %162 = arith.subf %161, %160 : vector<4x16x32xf32>
    %163 = arith.mulf %151, %162 : vector<4x16x32xf32>
    %164 = vector.extract_strided_slice %52 {offsets = [0, 6, 0], sizes = [4, 1, 32], strides = [1, 1, 1]} : vector<4x8x32xf32> to vector<4x1x32xf32>
    %165 = vector.broadcast %164 : vector<4x1x32xf32> to vector<4x16x32xf32>
    %166 = arith.mulf %154, %165 : vector<4x16x32xf32>
    %167 = arith.addf %163, %166 : vector<4x16x32xf32>
    %168 = vector.extract_strided_slice %50 {offsets = [0, 0, 7], sizes = [4, 16, 1], strides = [1, 1, 1]} : vector<4x16x8xf32> to vector<4x16x1xf32>
    %169 = vector.shape_cast %168 : vector<4x16x1xf32> to vector<4x16x1xf32>
    %170 = vector.broadcast %169 : vector<4x16x1xf32> to vector<4x16x32xf32>
    %171 = arith.mulf %170, %167 : vector<4x16x32xf32>
    %cst_36 = arith.constant dense<0.000000e+00> : vector<4x32xf32>
    %172 = vector.multi_reduction <add>, %171, %cst_36 [1] : vector<4x16x32xf32> to vector<4x32xf32>
    %173 = vector.shape_cast %172 : vector<4x32xf32> to vector<4x1x32xf32>
    %174 = tpu.concatenate %61, %77, %93, %109, %125, %141, %157, %173 in 1 : vector<4x1x32xf32>, vector<4x1x32xf32>, vector<4x1x32xf32>, vector<4x1x32xf32>, vector<4x1x32xf32>, vector<4x1x32xf32>, vector<4x1x32xf32>, vector<4x1x32xf32> -> vector<4x8x32xf32>
    %175 = vector.shape_cast %174 : vector<4x8x32xf32> to vector<32x32xf32>
    %c0_37 = arith.constant 0 : index
    %c0_38 = arith.constant 0 : index
    %176 = vector.load %arg8[%c0_37, %c0_38] : memref<32x32xf32, #tpu.memory_space<vmem>>, vector<32x32xf32>
    %cst_39 = arith.constant dense<0.000000e+00> : vector<32x32xf32>
    %177 = tpu.matmul %175, %176, %cst_39 {dimension_numbers = #tpu.dot_dimension_numbers<[1], [0], [0], [1], [0, 0, 1, 1], [], []>} : vector<32x32xf32>, vector<32x32xf32>, vector<32x32xf32> -> vector<32x32xf32>
    %178 = arith.addf %177, %9 : vector<32x32xf32>
    %c0_40 = arith.constant 0 : index
    %c0_41 = arith.constant 0 : index
    %179 = vector.load %arg9[%c0_40, %c0_41] : memref<1x32xf32, #tpu.memory_space<vmem>>, vector<1x32xf32>
    %180 = vector.broadcast %179 : vector<1x32xf32> to vector<32x32xf32>
    %181 = arith.addf %178, %180 : vector<32x32xf32>
    %182 = math.tanh %181 : vector<32x32xf32>
    %c0_42 = arith.constant 0 : index
    %c0_43 = arith.constant 0 : index
    %183 = vector.load %arg10[%c0_42, %c0_43] : memref<1x32xf32, #tpu.memory_space<vmem>>, vector<1x32xf32>
    %184 = vector.broadcast %183 : vector<1x32xf32> to vector<32x32xf32>
    %185 = arith.mulf %182, %184 : vector<32x32xf32>
    %cst_44 = arith.constant dense<0.000000e+00> : vector<32xf32>
    %186 = vector.multi_reduction <add>, %185, %cst_44 [1] : vector<32x32xf32> to vector<32xf32>
    %187 = vector.shape_cast %186 : vector<32xf32> to vector<32x1xf32>
    %c0_45 = arith.constant 0 : index
    %c0_46 = arith.constant 0 : index
    %188 = vector.load %arg11[%c0_45, %c0_46] : memref<1x1xf32, #tpu.memory_space<vmem>>, vector<1x1xf32>
    %189 = vector.broadcast %188 : vector<1x1xf32> to vector<32x1xf32>
    %190 = arith.addf %187, %189 : vector<32x1xf32>
    %191 = tpu.transpose %190, [1, 0] : vector<32x1xf32> -> vector<1x32xf32>
    %c0_47 = arith.constant 0 : index
    %c0_48 = arith.constant 0 : index
    %c0_49 = arith.constant 0 : index
    %192 = vector.load %arg12[%c0_47, %c0_48, %c0_49] : memref<1x1x32xf32, #tpu.memory_space<vmem>>, vector<1x1x32xf32>
    %193 = vector.shape_cast %192 : vector<1x1x32xf32> to vector<1x32xf32>
    %194 = vector.shape_cast %191 : vector<1x32xf32> to vector<1x1x32xf32>
    tpu.vector_store %arg12[%c0_47, %c0_48, %c0_49], %194 {strides = array<i32>} : memref<1x1x32xf32, #tpu.memory_space<vmem>>, vector<1x1x32xf32>,
    return
  }
  func.func @transform_0(%arg0: i32) -> (i32, i32, i32) {
    %c0_i32 = arith.constant 0 : i32
    %c0_i32_0 = arith.constant 0 : i32
    %c0_i32_1 = arith.constant 0 : i32
    return %arg0, %c0_i32, %c0_i32_0 : i32, i32, i32
  }
  func.func @transform_1(%arg0: i32) -> (i32, i32, i32) {
    %c0_i32 = arith.constant 0 : i32
    %c0_i32_0 = arith.constant 0 : i32
    %c0_i32_1 = arith.constant 0 : i32
    return %arg0, %c0_i32, %c0_i32_0 : i32, i32, i32
  }
  func.func @transform_2(%arg0: i32) -> (i32, i32, i32) {
    %c0_i32 = arith.constant 0 : i32
    %c0_i32_0 = arith.constant 0 : i32
    %c0_i32_1 = arith.constant 0 : i32
    return %arg0, %c0_i32, %c0_i32_0 : i32, i32, i32
  }
  func.func @transform_3(%arg0: i32) -> (i32, i32) {
    %c0_i32 = arith.constant 0 : i32
    %c0_i32_0 = arith.constant 0 : i32
    %c0_i32_1 = arith.constant 0 : i32
    return %c0_i32, %c0_i32_0 : i32, i32
  }
  func.func @transform_4(%arg0: i32) -> (i32, i32) {
    %c0_i32 = arith.constant 0 : i32
    %c0_i32_0 = arith.constant 0 : i32
    %c0_i32_1 = arith.constant 0 : i32
    return %c0_i32, %c0_i32_0 : i32, i32
  }
  func.func @transform_5(%arg0: i32) -> (i32, i32) {
    %c0_i32 = arith.constant 0 : i32
    %c0_i32_0 = arith.constant 0 : i32
    %c0_i32_1 = arith.constant 0 : i32
    return %c0_i32, %c0_i32_0 : i32, i32
  }
  func.func @transform_6(%arg0: i32) -> (i32, i32) {
    %c0_i32 = arith.constant 0 : i32
    %c0_i32_0 = arith.constant 0 : i32
    %c0_i32_1 = arith.constant 0 : i32
    return %c0_i32, %c0_i32_0 : i32, i32
  }
  func.func @transform_7(%arg0: i32) -> (i32, i32) {
    %c0_i32 = arith.constant 0 : i32
    %c0_i32_0 = arith.constant 0 : i32
    %c0_i32_1 = arith.constant 0 : i32
    return %c0_i32, %c0_i32_0 : i32, i32
  }
  func.func @transform_8(%arg0: i32) -> (i32, i32) {
    %c0_i32 = arith.constant 0 : i32
    %c0_i32_0 = arith.constant 0 : i32
    %c0_i32_1 = arith.constant 0 : i32
    return %c0_i32, %c0_i32_0 : i32, i32
  }
  func.func @transform_9(%arg0: i32) -> (i32, i32) {
    %c0_i32 = arith.constant 0 : i32
    %c0_i32_0 = arith.constant 0 : i32
    %c0_i32_1 = arith.constant 0 : i32
    return %c0_i32, %c0_i32_0 : i32, i32
  }
  func.func @transform_10(%arg0: i32) -> (i32, i32) {
    %c0_i32 = arith.constant 0 : i32
    %c0_i32_0 = arith.constant 0 : i32
    %c0_i32_1 = arith.constant 0 : i32
    return %c0_i32, %c0_i32_0 : i32, i32
  }
  func.func @transform_11(%arg0: i32) -> (i32, i32, i32) {
    %c0_i32 = arith.constant 0 : i32
    %c0_i32_0 = arith.constant 0 : i32
    %c0_i32_1 = arith.constant 0 : i32
    return %arg0, %c0_i32, %c0_i32_0 : i32, i32, i32
  }
}

</mosaic_0001>

<bundles_post_ra>
// kernel: dkvmn_forward_pallas.1
= control target key start
LH: loop header
LB: loop body
LE: loop exit
PB: predicated region body
PF: predicated region fallthrough
CT: control target
= control target key end

     0   :  { %s2839_s19 = smov 0   ;;  %s4168_s0 = inlined_call_operand.vmem [shape: f32[8,8,32], index: 0, kind: input, shape index: {}]   ;;  %s4169_s1 = inlined_call_operand.vmem [shape: f32[8,8,32], index: 1, kind: input, shape index: {}]   ;;  %s4170_s2 = inlined_call_operand.vmem [shape: f32[8,8,1], index: 2, kind: input, shape index: {}]   ;;  %s4171_s3 = inlined_call_operand.vmem [shape: f32[32,48], index: 3, kind: input, shape index: {}]   ;;  %s4172_s4 = inlined_call_operand.vmem [shape: f32[32,64], index: 4, kind: input, shape index: {}]   ;;  %s4173_s5 = inlined_call_operand.vmem [shape: f32[1,64], index: 5, kind: input, shape index: {}]   ;;  %s4174_s6 = inlined_call_operand.vmem [shape: f32[16,32], index: 6, kind: input, shape index: {}]   ;;  %s4175_s7 = inlined_call_operand.vmem [shape: f32[32,32], index: 7, kind: input, shape index: {}]   ;;  %s4176_s8 = inlined_call_operand.vmem [shape: f32[1,32], index: 8, kind: input, shape index: {}]   ;;  %s4177_s9 = inlined_call_operand.vmem [shape: f32[1,32], index: 9, kind: input, shape index: {}]   ;;  %s4178_s10 = inlined_call_operand.<no memory space> [shape: f32[1,1], index: 10, kind: input, shape index: {}]   ;;  %s4179_s11 = inlined_call_operand.vmem [shape: f32[2,1,32], index: 11, kind: output, shape index: {}]  }
   0x1   :  { %v16_v0 = vstv %s4178_s10 }
   0x2   :  { %17 = vst [vmem:[#allocation2] sm:$0x1] %v16_v0 }
   0x3 LB: > { %s2845_s20 = sadd.s32 4294967295, %s2764_s19   ;;  %p2538_p0 = scmp.ge.s32.totalorder %s2764_s19, 1  ;;  %s2764_s19 = sphi %s2839_s19, %s23_s19  }
   0x4   : > { %p362_p1 = scmp.lt.s32.totalorder %s2764_s19, 3 }
   0x6   : > { %p363_p2 = pnand %p2538_p0, %p362_p1 }
   0x8   : > { %366 = sbr.rel (%p363_p2) target bundleno = 1576 (0x628), region = 64 }
   0xd   : > { %v446_v1 = vld [vmem:[%s4171_s3 + $0x18] sm:$0xff]  ;;  %v445_v2 = vld [vmem:[%s4171_s3 + $0x10] sm:$0xff]  ;;  %s2539_s24 = sshll.u32 %s2845_s20, 2  ;;  %v4180_v5 = vmov 0   ;;  %v444_v6 = vld [vmem:[%s4171_s3 + $0x8] sm:$0xff]  ;;  %vm447_vm0 = vcmask 261120   ;;  %v968_v48 = vlaneseq }
   0xe   : > { %2587 = vmatprep.subr.mxu0 %v446_v1  ;;  %p411_p3 = scmp.lt.s32.totalorder %s2539_s24, 7  ;;  %v593_v3 = vld [vmem:[%s4172_s4 + $0x18] sm:$0xff]  ;;  %v592_v4 = vld [vmem:[%s4172_s4 + $0x10] sm:$0xff]  ;;  %2656 = vset.pattern.permute.xlu1 %v4180_v5  ;;  %v591_v7 = vld [vmem:[%s4172_s4 + $0x8] sm:$0xff]  ;;  %vm545_vm1 = vcmask 130048   ;;  %s2774_s12 = smov 96  }
   0xf   : > { %2588 = vmatpush3.msra.mxu0 %v446_v1  ;;  %2601 = vmatprep.subr.mxu1 %v593_v3  ;;  %v443_v8 = vld [vmem:[%s4171_s3] sm:$0xff]  ;;  %v969_v50 = vshrl.u32 %v968_v48, 7  ;;  %vm2228_vm2 = vcmask 1040384   ;;  %vm2233_vm3 = vcmask 1041408   ;;  %vm2238_vm4 = vcmask 1042432   ;;  %p428_p4 = scmp.lt.s32.totalorder %s2845_s20, 1 }
  0x10   : > { %2589 = vmatprep.subr.mxu0 %v445_v2  ;;  %s4538_s24 = smov (!%p411_p3, %s2539_s24), 7  ;;  %2602 = vmatpush3.msra.mxu1 %v593_v3  ;;  %v590_v9 = vld [vmem:[%s4172_s4] sm:$0xff]  ;;  %vm2243_vm5 = vcmask 1043456   ;;  %vm2248_vm6 = vcmask 1044480   ;;  %vm2253_vm7 = vcmask 1045504   ;;  %vm2258_vm8 = vcmask 1046528  }
  0x11   : > { %2590 = vmatpush3.msra.mxu0 %v445_v2  ;;  %2603 = vmatprep.subr.mxu1 %v592_v4  ;;  %s2540_s16 = sshll.u32 %s4538_s24, 3  ;;  %v2549_v24 = vld [vmem:[%s4173_s5] ss:$0 sm:$0xff]  ;;  %v2920_v56 = vsub.s32 0, %v969_v50  ;;  %v2922_v59 = vsub.s32 1, %v969_v50  ;;  %v2924_v60 = vsub.s32 2, %v969_v50 }
  0x12   : > { %2591 = vmatprep.subr.mxu0 %v444_v6  ;;  %2604 = vmatpush3.msra.mxu1 %v592_v4  ;;  %s414_s21 = scalar_lea.vmem %s4168_s0, %s2540_s16  ;;  %s420_s26 = scalar_lea.vmem %s4169_s1, %s2540_s16  ;;  %v2928_v0 = vsub.s32 3, %v969_v50  ;;  %v2930_v1 = vsub.s32 4, %v969_v50  ;;  %v2932_v3 = vsub.s32 5, %v969_v50  ;;  %v2934_v4 = vsub.s32 6, %v969_v50 }
  0x13   : > { %2592 = vmatpush3.msra.mxu0 %v444_v6  ;;  %2605 = vmatprep.subr.mxu1 %v591_v7  ;;  %v431_v10 = vld [vmem:[%s414_s21] sm:$0xff]  ;;  %v432_v11 = vld [vmem:[%s414_s21 + $0x8] sm:$0xff]  ;;  %v433_v12 = vld [vmem:[%s414_s21 + $0x10] sm:$0xff]  ;;  %s426_s28 = scalar_lea.vmem %s4170_s2, %s2540_s16  ;;  %s2775_s24 = smov 112   ;;  %vm2461_vm9 = vcmask 253952  }
  0x14   : > { %2593 = vmatprep.subr.mxu0 %v443_v8  ;;  %2606 = vmatpush3.msra.mxu1 %v591_v7  ;;  %v435_v13 = vld [vmem:[%s420_s26] sm:$0xff]  ;;  %v436_v14 = vld [vmem:[%s420_s26 + $0x8] sm:$0xff]  ;;  %v434_v16 = vld [vmem:[%s414_s21 + $0x18] sm:$0xff]  ;;  %s4540_s20 = smov (!%p428_p4, %s2845_s20), 1 }
  0x15   : > { %2594 = vmatpush3.msra.mxu0 %v443_v8  ;;  %2595 = vmatprep.mubr.msk.f32.mxu0 %vm447_vm0, %v431_v10  ;;  %v439_v15 = vld [vmem:[%s426_s28] sm:$0xff]  ;;  %v437_v17 = vld [vmem:[%s420_s26 + $0x10] sm:$0xff]  ;;  %v440_v18 = vld [vmem:[%s426_s28 + $0x8] sm:$0xff]  ;;  %s430_s14 = scalar_lea.vmem %s4179_s11, %s4540_s20 }
  0x16   : > { %2596 = vmatmul.mubr.msk.f32.vlgmr.msra.gmra.mxu0 %vm447_vm0, %v432_v11  ;;  %2607 = vmatprep.subr.mxu1 %v590_v9  ;;  %v441_v19 = vld [vmem:[%s426_s28 + $0x10] sm:$0xff]  ;;  %v438_v20 = vld [vmem:[%s420_s26 + $0x18] sm:$0xff] }
  0x17   : > { %2598 = vmatprep.mubr.msk.f32.mxu0 %vm447_vm0, %v433_v12  ;;  %2608 = vmatpush3.msra.mxu1 %v590_v9  ;;  %v442_v21 = vld [vmem:[%s426_s28 + $0x18] sm:$0xff] }
  0x18   : > { %2609 = vmatprep.mubr.msk.f32.mxu1 %vm447_vm0, %v435_v13  ;;  %724 = vperm.xlu1 %2656, %v439_v15  }
  0x19   : > { %2610 = vmatmul.mubr.msk.f32.vlgmr.msra.gmra.mxu1 %vm447_vm0, %v436_v14  ;;  %2657 = vset.pattern.permute.xlu0 %v4180_v5 }
  0x1a   : > { %2599 = vmatmul.mubr.msk.f32.gmra.mxu0 %vm447_vm0, %v434_v16  ;;  %2612 = vmatprep.mubr.msk.f32.mxu1 %vm447_vm0, %v437_v17 }
  0x1b   : > { %729 = vperm.xlu0 %2657, %v440_v18  }
  0x1c   : > { %734 = vperm.xlu1 %2656, %v441_v19  }
  0x1d   : > { %2613 = vmatmul.mubr.msk.f32.gmra.mxu1 %vm447_vm0, %v438_v20 }
  0x20   : > { %739 = vperm.xlu1 %2656, %v442_v21  }
  0x93   : > { %v2918_v46 = vpop.permute.xlu1 %724 }
  0x96   : > { %v2961_v16 = vpop.permute.xlu0 %729 }
  0x97   : > { %v735_v49 = vpop.permute.xlu1 %734 }
  0x9b   : > { %v740_v54 = vpop.permute.xlu1 %739 }
  0xd6   : > { %v2893_v22 = vpop.f32.mrf.mxu0 }
  0xd7   : > { %4297 = vst [vmem:[#allocation3_spill] sm:$0xff] %v2893_v22  ;;  %v549_v23 = vsel %vm545_vm1, %v2893_v22, -inf }
  0xd8   : > { %550 = vmax.xlane.f32.xlu0 %v549_v23  ;;  %v2900_v25 = vpop.f32.mrf.mxu0 }
  0xd9   : > { %4298 = vst [vmem:[#allocation4_spill] sm:$0xff] %v2900_v25  ;;  %v2611_v26 = vpop.f32.mrf.mxu1  ;;  %v546_v29 = vsel %vm545_vm1, %v2900_v25, -inf }
  0xda   : > { %v2902_v27 = vpop.f32.mrf.mxu0  ;;  %v2904_v28 = vadd.f32 %v2611_v26, %v2549_v24 }
  0xdb   : > { %4299 = vst [vmem:[#allocation5_spill] sm:$0xff] %v2902_v27  ;;  %v555_v30 = vsel %vm545_vm1, %v2902_v27, -inf  ;;  %v679_v31 = vpop.f32.mrf.mxu1 }
  0xdc   : > { %547 = vmax.xlane.f32.xlu0 %v546_v29  ;;  %556 = vmax.xlane.f32.xlu1 %v555_v30  ;;  %v2910_v32 = vpop.f32.mrf.mxu0  ;;  %v699_v33 = vsub.f32 0.0, %v2904_v28  ;;  %v2913_v34 = vadd.f32 %v2549_v24, %v679_v31 }
  0xdd   : > { %4300 = vst [vmem:[#allocation6_spill] sm:$0xff] %v2910_v32  ;;  %v552_v35 = vsel %vm545_vm1, %v2910_v32, -inf  ;;  %v2614_v36 = vpop.f32.mrf.mxu1 }
  0xde   : > { %v704_v37 = vmul.f32 1.442695, %v699_v33  ;;  %v698_v38 = vsub.f32 0.0, %v2913_v34  ;;  %v695_v39 = vadd.f32 %v2614_v36, %v2549_v24 }
  0xdf   : > { %v689_v40 = vpop.f32.mrf.mxu1 }
  0xe0   : > { %553 = vmax.xlane.f32.xlu1 %v552_v35  ;;  %2710 = vpow2.f32 %v704_v37  ;;  %v702_v41 = vmul.f32 1.442695, %v698_v38  ;;  %v701_v42 = vsub.f32 0.0, %v695_v39  ;;  %v690_v43 = vadd.f32 %v2549_v24, %v689_v40 }
  0xe1   : > { %2712 = vtanh.f32 %v695_v39 }
  0xe2   : > { %2714 = vpow2.f32 %v702_v41  ;;  %v708_v44 = vmul.f32 1.442695, %v701_v42  ;;  %v700_v45 = vsub.f32 0.0, %v690_v43 }
  0xe3   : > { %2716 = vtanh.f32 %v690_v43 }
  0xe4   : > { %2718 = vpow2.f32 %v708_v44  ;;  %v706_v47 = vmul.f32 1.442695, %v700_v45 }
  0xe6   : > { %2720 = vpow2.f32 %v706_v47 }
  0xed   : > { %v2711_v51 = vpop.eup %2710 }
  0xee   : > { %v2713_v52 = vpop.eup %2712  ;;  %v711_v53 = vadd.f32 1.0, %v2711_v51 }
  0xef   : > { %v2715_v55 = vpop.eup %2714  ;;  %v2926_v63 = vmul.f32 %v2713_v52, %v740_v54 }
  0xf0   : > { %v2717_v57 = vpop.eup %2716  ;;  %2722 = vrcp.f32 %v711_v53  ;;  %v710_v58 = vadd.f32 1.0, %v2715_v55 }
  0xf1   : > { %v2719_v61 = vpop.eup %2718  ;;  %v752_v62 = vmul.f32 %v2717_v57, %v735_v49  ;;  %v2959_v15 = vrot.slane %v2926_v63, %v2934_v4 }
  0xf2   : > { %2724 = vrcp.f32 %v710_v58  ;;  %v713_v2 = vadd.f32 1.0, %v2719_v61 }
  0xf3   : > { %v2721_v6 = vpop.eup %2720  ;;  %v2937_v7 = vrot.slane %v752_v62, %v2920_v56  ;;  %v2940_v8 = vrot.slane %v752_v62, %v2922_v59  ;;  %v2943_v9 = vrot.slane %v752_v62, %v2924_v60  ;;  %v2946_v10 = vrot.slane %v752_v62, %v2928_v0  ;;  %4302 = vst [vmem:[#allocation8_spill] sm:$0xff] %v2959_v15 }
  0xf4   : > { %2726 = vrcp.f32 %v713_v2  ;;  %v712_v11 = vadd.f32 1.0, %v2721_v6  ;;  %v2949_v12 = vrot.slane %v752_v62, %v2930_v1  ;;  %v2952_v13 = vrot.slane %v752_v62, %v2932_v3 }
  0xf5   : > { %v2955_v14 = vrot.slane %v752_v62, %v2934_v4 }
  0xf6   : > { %2728 = vrcp.f32 %v712_v11 }
  0xf7   : > { %4301 = vst [vmem:[#allocation7_spill] sm:$0xff] %v2955_v14 }
  0xfd   : > { %v2723_v17 = vpop.eup %2722 }
  0xfe   : > { %v743_v18 = vmul.f32 %v2723_v17, %v2961_v16 }
  0xff   : > { %v2725_v19 = vpop.eup %2724 }
 0x100   : > { %v742_v20 = vmul.f32 %v2725_v19, %v2918_v46  ;;  %v2966_v21 = vrot.slane %v743_v18, %v2920_v56  ;;  %v2969_v23 = vrot.slane %v743_v18, %v2922_v59  ;;  %v2972_v24 = vrot.slane %v743_v18, %v2924_v60 }
 0x101   : > { %v2727_v26 = vpop.eup %2726  ;;  %v2975_v29 = vrot.slane %v743_v18, %v2928_v0  ;;  %v2978_v30 = vrot.slane %v743_v18, %v2930_v1  ;;  %v2981_v31 = vrot.slane %v743_v18, %v2932_v3  ;;  %v2984_v33 = vrot.slane %v743_v18, %v2934_v4 }
 0x102   : > { %v745_v35 = vmul.f32 %v2727_v26, %v740_v54  ;;  %v2987_v36 = vrot.slane %v742_v20, %v2924_v60  ;;  %v2990_v37 = vrot.slane %v742_v20, %v2930_v1  ;;  %v2993_v38 = vrot.slane %v742_v20, %v2934_v4 }
 0x103   : > { %v2729_v39 = vpop.eup %2728  ;;  %v2996_v40 = vrot.slane %v742_v20, %v2922_v59  ;;  %v2999_v41 = vrot.slane %v742_v20, %v2928_v0  ;;  %v3002_v42 = vrot.slane %v742_v20, %v2932_v3  ;;  %v3005_v43 = vrot.slane %v742_v20, %v2920_v56 }
 0x104   : > { %4303 = vst [vmem:[#allocation9_spill] sm:$0xff] %v2987_v36  ;;  %4304 = vst [vmem:[#allocation10_spill] sm:$0xff] %v2990_v37  ;;  %v744_v44 = vmul.f32 %v2729_v39, %v735_v49  ;;  %v3008_v45 = vrot.slane %v745_v35, %v2920_v56  ;;  %v3011_v47 = vrot.slane %v745_v35, %v2924_v60 }
 0x105   : > { %4305 = vst [vmem:[#allocation11_spill] sm:$0xff] %v2993_v38  ;;  %4306 = vst [vmem:[#allocation12_spill] sm:$0xff] %v2999_v41  ;;  %v3014_v48 = vrot.slane %v745_v35, %v2930_v1  ;;  %v3017_v50 = vrot.slane %v745_v35, %v2922_v59  ;;  %v3020_v51 = vrot.slane %v745_v35, %v2928_v0 }
 0x106   : > { %4307 = vst [vmem:[#allocation13_spill] sm:$0xff] %v3002_v42  ;;  %4308 = vst [vmem:[#allocation14_spill] sm:$0xff] %v3011_v47  ;;  %v3023_v52 = vrot.slane %v745_v35, %v2932_v3  ;;  %v3026_v49 = vrot.slane %v745_v35, %v2934_v4  ;;  %v3029_v53 = vrot.slane %v744_v44, %v2920_v56 }
 0x107   : > { %4309 = vst [vmem:[#allocation15_spill] sm:$0xff] %v3014_v48  ;;  %4310 = vst [vmem:[#allocation16_spill] sm:$0xff] %v3017_v50  ;;  %v3032_v54 = vrot.slane %v744_v44, %v2922_v59  ;;  %v3035_v55 = vrot.slane %v744_v44, %v2924_v60  ;;  %v3038_v57 = vrot.slane %v744_v44, %v2928_v0  ;;  %v4337_v50 = vmov 3  }
 0x108   : > { %4311 = vst [vmem:[#allocation17_spill] sm:$0xff] %v3020_v51  ;;  %4312 = vst [vmem:[#allocation18_spill] sm:$0xff] %v3023_v52  ;;  %v3041_v58 = vrot.slane %v744_v44, %v2930_v1  ;;  %v3044_v61 = vrot.slane %v744_v44, %v2932_v3  ;;  %v3047_v62 = vrot.slane %v744_v44, %v2934_v4 }
 0x109   : > { %4313 = vst [vmem:[#allocation19_spill] sm:$0xff] %v3026_v49  ;;  %4314 = vst [vmem:[#allocation20_spill] sm:$0xff] %v3032_v54  ;;  %v4331_v54 = vmov 1  }
 0x10a   : > { %4315 = vst [vmem:[#allocation21_spill] sm:$0xff] %v3035_v55  ;;  %4316 = vst [vmem:[#allocation22_spill] sm:$0xff] %v3038_v57 }
 0x10b   : > { %4317 = vst [vmem:[#allocation23_spill] sm:$0xff] %v3041_v58  ;;  %4318 = vst [vmem:[#allocation24_spill] sm:$0xff] %v3044_v61 }
 0x10c   : > { %4319 = vst [vmem:[#allocation25_spill] sm:$0xff] %v3047_v62 }
 0x161   : > { %v551_v2 = vpop.xlane.xlu0 %550 }
 0x162   : > { %v559_v6 = vsub.f32 %v2893_v22, %v551_v2 }
 0x164   : > { %v564_v11 = vmul.f32 1.442695, %v559_v6 }
 0x165   : > { %v548_v17 = vpop.xlane.xlu0 %547  ;;  %v557_v18 = vpop.xlane.xlu1 %556 }
 0x166   : > { %2730 = vpow2.f32 %v564_v11  ;;  %v558_v19 = vsub.f32 %v2900_v25, %v548_v17  ;;  %v561_v20 = vsub.f32 %v2902_v27, %v557_v18 }
 0x168   : > { %v562_v26 = vmul.f32 1.442695, %v558_v19  ;;  %v568_v35 = vmul.f32 1.442695, %v561_v20 }
 0x169   : > { %v554_v39 = vpop.xlane.xlu1 %553 }
 0x16a   : > { %2732 = vpow2.f32 %v562_v26  ;;  %v560_v5 = vsub.f32 %v2910_v32, %v554_v39 }
 0x16b   : > { %2734 = vpow2.f32 %v568_v35 }
 0x16c   : > { %v566_v44 = vmul.f32 1.442695, %v560_v5 }
 0x16e   : > { %2736 = vpow2.f32 %v566_v44 }
 0x173   : > { %v2731_v62 = vpop.eup %2730 }
 0x174   : > { %v573_v2 = vsel %vm545_vm1, %v2731_v62, 0.0 }
 0x175   : > { %574 = vadd.xlane.f32.xlu1 %v573_v2 }
 0x177   : > { %v2733_v6 = vpop.eup %2732 }
 0x178   : > { %v2735_v22 = vpop.eup %2734  ;;  %v570_v11 = vsel %vm545_vm1, %v2733_v6, 0.0 }
 0x179   : > { %571 = vadd.xlane.f32.xlu0 %v570_v11  ;;  %v579_v17 = vsel %vm545_vm1, %v2735_v22, 0.0 }
 0x17a   : > { %580 = vadd.xlane.f32.xlu1 %v579_v17 }
 0x17b   : > { %v2737_v18 = vpop.eup %2736 }
 0x17c   : > { %v576_v19 = vsel %vm545_vm1, %v2737_v18, 0.0 }
 0x17d   : > { %577 = vadd.xlane.f32.xlu0 %v576_v19  ;;  %v4190_v19 = vmov 1  }
 0x1fe   : > { %v575_v20 = vpop.xlane.xlu1 %574 }
 0x1ff   : > { %2738 = vrcp.f32 %v575_v20 }
 0x202   : > { %v572_v5 = vpop.xlane.xlu0 %571 }
 0x203   : > { %2740 = vrcp.f32 %v572_v5  ;;  %v581_v26 = vpop.xlane.xlu1 %580  ;;  %v4191_v5 = vmov 3  }
 0x204   : > { %2742 = vrcp.f32 %v581_v26 }
 0x206   : > { %v578_v35 = vpop.xlane.xlu0 %577 }
 0x207   : > { %2744 = vrcp.f32 %v578_v35 }
 0x208   : > { %2746 = vtanh.f32 %v2904_v28 }
 0x209   : > { %2748 = vtanh.f32 %v2913_v34 }
 0x20c   : > { %v2739_v39 = vpop.eup %2738 }
 0x20d   : > { %v585_v44 = vmul.f32 %v2739_v39, %v2731_v62  ;;  %v4189_v62 = vmov 2  }
 0x20f   : > { %786 = vxpose.xlu1.b32.start.end [1/1] (short) (narrow) %v585_v44, 16 }
 0x210   : > { %v2741_v2 = vpop.eup %2740 }
 0x211   : > { %v583_v11 = vmul.f32 %v2741_v2, %v2733_v6  ;;  %v2743_v27 = vpop.eup %2742  ;;  %v4197_v6 = vmov 5  }
 0x212   : > { %v589_v17 = vmul.f32 %v2743_v27, %v2735_v22  ;;  %v4187_v22 = vmov 4   ;;  %v4188_v27 = vmov 7  }
 0x213   : > { %754 = vxpose.xlu0.b32.start.end [1/1] (short) (narrow) %v583_v11, 16 }
 0x214   : > { %v2745_v32 = vpop.eup %2744 }
 0x215   : > { %v587_v52 = vmul.f32 %v2745_v32, %v2737_v18  ;;  %v4192_v32 = vmov 6   ;;  %v4320_v18 = vmov 0   ;;  %v2747_v28 = vpop.eup %2746 }
 0x216   : > { %v2749_v25 = vpop.eup %2748 }
 0x217   : > { %v3186_v48 = vmul.f32 %v2749_v25, %v2918_v46 }
 0x218   : > { %850 = vxpose.xlu0.b32.start.end [1/1] (short) (narrow) %v589_v17, 16  ;;  %v3124_v17 = vmul.f32 %v2747_v28, %v2961_v16 }
 0x219   : > { %v3204_v25 = vrot.slane %v3186_v48, %v2920_v56 }
 0x21a   : > { %v3142_v16 = vrot.slane %v3124_v17, %v2922_v59  ;;  %v3155_v34 = vrot.slane %v3124_v17, %v2924_v60 }
 0x21d   : > { %818 = vxpose.xlu0.b32.start.end [1/1] (short) (narrow) %v587_v52, 16 }
 0x22d   : > { %2658 = vset.pattern.permute.xlu1 %v4190_v19 }
 0x28b   : > { %v802_v20 = vpop.trf.xlu1 }
 0x28c   : > { %1081 = vperm.xlu1 %2658, %v802_v20   ;;  %896 = vperm.xlu0 %2657, %v802_v20  }
 0x28f   : > { %v770_v52 = vpop.trf.xlu0  ;;  %v803_v39 = vpop.trf.xlu1 }
 0x290   : > { %2660 = vset.pattern.permute.xlu1 %v4191_v5  ;;  %2659 = vset.pattern.permute.xlu0 %v4189_v62 }
 0x291   : > { %1441 = vperm.xlu1 %2660, %v802_v20   ;;  %1261 = vperm.xlu0 %2659, %v802_v20  }
 0x293   : > { %v3070_v26 = vpop.trf.xlu0 }
 0x295   : > { %2662 = vset.pattern.permute.xlu1 %v4197_v6  ;;  %2661 = vset.pattern.permute.xlu0 %v4187_v22 }
 0x296   : > { %1801 = vperm.xlu1 %2662, %v802_v20   ;;  %1621 = vperm.xlu0 %2661, %v802_v20  }
 0x297   : > { %v3074_v35 = vpop.trf.xlu0 }
 0x298   : > { %4321 = vst [vmem:[#allocation26_spill] sm:$0xff] %v3074_v35 }
 0x29a   : > { %2664 = vset.pattern.permute.xlu1 %v4188_v27  ;;  %2663 = vset.pattern.permute.xlu0 %v4192_v32 }
 0x29b   : > { %2161 = vperm.xlu1 %2664, %v802_v20   ;;  %1981 = vperm.xlu0 %2663, %v802_v20   ;;  %v3079_v44 = vpop.trf.xlu0  ;;  %v3130_v20 = vrot.slane %v3124_v17, %v2920_v56 }
 0x29c   : > { %4322 = vst [vmem:[#allocation27_spill] sm:$0xff] %v3079_v44 }
 0x29f   : > { %2665 = vset.pattern.permute.xlu1 %v4320_v18  ;;  %2666 = vset.pattern.permute.xlu0 %v4190_v19  ;;  %v834_v2 = vpop.trf.xlu0 }
 0x2a0   : > { %886 = vperm.xlu1 %2665, %v770_v52   ;;  %1073 = vperm.xlu0 %2666, %v770_v52  }
 0x2a3   : > { %v3117_v11 = vpop.trf.xlu0 }
 0x2a4   : > { %2667 = vset.pattern.permute.xlu1 %v4189_v62  ;;  %2668 = vset.pattern.permute.xlu0 %v4191_v5 }
 0x2a5   : > { %1253 = vperm.xlu1 %2667, %v770_v52   ;;  %1433 = vperm.xlu0 %2668, %v770_v52  }
 0x2a9   : > { %2669 = vset.pattern.permute.xlu1 %v4187_v22  ;;  %2670 = vset.pattern.permute.xlu0 %v4197_v6 }
 0x2aa   : > { %1613 = vperm.xlu1 %2669, %v770_v52   ;;  %1793 = vperm.xlu0 %2670, %v770_v52  }
 0x2ae   : > { %2671 = vset.pattern.permute.xlu1 %v4192_v32  ;;  %2672 = vset.pattern.permute.xlu0 %v4188_v27 }
 0x2af   : > { %1973 = vperm.xlu1 %2671, %v770_v52   ;;  %2153 = vperm.xlu0 %2672, %v770_v52  }
 0x2b3   : > { %2673 = vset.pattern.permute.xlu1 %v4320_v18  ;;  %2680 = vset.pattern.permute.xlu0 %v4192_v32 }
 0x2b4   : > { %1997 = vperm.xlu0 %2680, %v3074_v35   ;;  %901 = vperm.xlu1 %2673, %v803_v39  }
 0x2b8   : > { %2681 = vset.pattern.permute.xlu0 %v4188_v27  ;;  %916 = vperm.xlu1 %2673, %v3074_v35  }
 0x2b9   : > { %2165 = vperm.xlu0 %2681, %v803_v39  }
 0x2bc   : > { %2674 = vset.pattern.permute.xlu1 %v4190_v19 }
 0x2bd   : > { %2683 = vset.pattern.permute.xlu0 %v4320_v18  ;;  %1085 = vperm.xlu1 %2674, %v803_v39  }
 0x2be   : > { %906 = vperm.xlu0 %2683, %v834_v2  }
 0x2c1   : > { %1097 = vperm.xlu1 %2674, %v3074_v35  }
 0x2c2   : > { %2685 = vset.pattern.permute.xlu0 %v4190_v19 }
 0x2c3   : > { %1089 = vperm.xlu0 %2685, %v834_v2  }
 0x2c5   : > { %2675 = vset.pattern.permute.xlu1 %v4189_v62 }
 0x2c6   : > { %1265 = vperm.xlu1 %2675, %v803_v39  }
 0x2c7   : > { %2686 = vset.pattern.permute.xlu0 %v4189_v62 }
 0x2c8   : > { %1257 = vperm.xlu0 %2686, %v3070_v26  }
 0x2ca   : > { %1277 = vperm.xlu1 %2675, %v3074_v35  }
 0x2cc   : > { %1269 = vperm.xlu0 %2686, %v834_v2  }
 0x2ce   : > { %2676 = vset.pattern.permute.xlu1 %v4191_v5 }
 0x2cf   : > { %1445 = vperm.xlu1 %2676, %v803_v39  }
 0x2d0   : > { %2688 = vset.pattern.permute.xlu0 %v4191_v5 }
 0x2d1   : > { %1449 = vperm.xlu0 %2688, %v834_v2  }
 0x2d3   : > { %1457 = vperm.xlu1 %2676, %v3074_v35  }
 0x2d5   : > { %2689 = vset.pattern.permute.xlu0 %v4187_v22 }
 0x2d6   : > { %1617 = vperm.xlu0 %2689, %v3070_v26  }
 0x2d7   : > { %2677 = vset.pattern.permute.xlu1 %v4187_v22 }
 0x2d8   : > { %1625 = vperm.xlu1 %2677, %v803_v39  }
 0x2da   : > { %1629 = vperm.xlu0 %2689, %v834_v2  }
 0x2dc   : > { %1637 = vperm.xlu1 %2677, %v3074_v35  }
 0x2de   : > { %2691 = vset.pattern.permute.xlu0 %v4197_v6 }
 0x2df   : > { %1809 = vperm.xlu0 %2691, %v834_v2  }
 0x2e0   : > { %2678 = vset.pattern.permute.xlu1 %v4197_v6 }
 0x2e1   : > { %1805 = vperm.xlu1 %2678, %v803_v39  }
 0x2e3   : > { %2692 = vset.pattern.permute.xlu0 %v4192_v32 }
 0x2e4   : > { %1977 = vperm.xlu0 %2692, %v3070_v26  }
 0x2e5   : > { %1817 = vperm.xlu1 %2678, %v3074_v35   ;;  %v4334_v35 = vmov 2  }
 0x2e8   : > { %1989 = vperm.xlu0 %2692, %v834_v2  }
 0x2e9   : > { %2679 = vset.pattern.permute.xlu1 %v4192_v32 }
 0x2ea   : > { %1985 = vperm.xlu1 %2679, %v803_v39  }
 0x2ec   : > { %2694 = vset.pattern.permute.xlu0 %v4320_v18 }
 0x2ed   : > { %921 = vperm.xlu0 %2694, %v3079_v44  }
 0x2ee   : > { %2682 = vset.pattern.permute.xlu1 %v4320_v18 }
 0x2ef   : > { %891 = vperm.xlu1 %2682, %v3070_v26  }
 0x2f1   : > { %2696 = vset.pattern.permute.xlu0 %v4189_v62 }
 0x2f2   : > { %1281 = vperm.xlu0 %2696, %v3079_v44  }
 0x2f3   : > { %2684 = vset.pattern.permute.xlu1 %v4190_v19 }
 0x2f4   : > { %1077 = vperm.xlu1 %2684, %v3070_v26  }
 0x2f6   : > { %2698 = vset.pattern.permute.xlu0 %v4187_v22 }
 0x2f7   : > { %1641 = vperm.xlu0 %2698, %v3079_v44  }
 0x2f8   : > { %2687 = vset.pattern.permute.xlu1 %v4191_v5 }
 0x2f9   : > { %1437 = vperm.xlu1 %2687, %v3070_v26  }
 0x2fb   : > { %2708 = vset.pattern.permute.xlu0 %v4188_v27 }
 0x2fc   : > { %2173 = vperm.xlu0 %2708, %v3117_v11  }
 0x2fd   : > { %2690 = vset.pattern.permute.xlu1 %v4197_v6 }
 0x2fe   : > { %1797 = vperm.xlu1 %2690, %v3070_v26  }
 0x302   : > { %2693 = vset.pattern.permute.xlu1 %v4188_v27 }
 0x303   : > { %2157 = vperm.xlu1 %2693, %v3070_v26  }
 0x307   : > { %v3132_v52 = vpop.permute.xlu0 %896  ;;  %2169 = vperm.xlu1 %2693, %v834_v2   ;;  %v3134_v39 = vpop.permute.xlu1 %1081 }
 0x308   : > { %4323 = vst [vmem:[#allocation28_spill] sm:$0xff] %v3134_v39  ;;  %v1026_v22 = vmul.f32 %v3130_v20, %v3132_v52  ;;  %v1206_v28 = vmul.f32 %v3142_v16, %v3134_v39 }
 0x30a   : > { %1044 = vrot.lane.b32.xlu0 %v1026_v22, %s2774_s12 }
 0x30b   : > { %2695 = vset.pattern.permute.xlu1 %v4190_v19 }
 0x30c   : > { %v3145_v26 = vpop.permute.xlu0 %1261  ;;  %1101 = vperm.xlu1 %2695, %v3079_v44   ;;  %v3148_v2 = vpop.permute.xlu1 %1441 }
 0x30d   : > { %v1386_v22 = vmul.f32 %v3155_v34, %v3145_v26 }
 0x30e   : > { %1224 = vrot.lane.b32.xlu0 %v1206_v28, %s2774_s12  ;;  %v3168_v28 = vrot.slane %v3124_v17, %v2928_v0 }
 0x310   : > { %2697 = vset.pattern.permute.xlu1 %v4191_v5  ;;  %v1566_v19 = vmul.f32 %v3168_v28, %v3148_v2 }
 0x311   : > { %v3160_v27 = vpop.permute.xlu0 %1621  ;;  %1461 = vperm.xlu1 %2697, %v3079_v44   ;;  %v3163_v62 = vpop.permute.xlu1 %1801 }
 0x312   : > { %4324 = vst [vmem:[#allocation29_spill] sm:$0xff] %v3163_v62  ;;  %1404 = vrot.lane.b32.xlu0 %v1386_v22, %s2774_s12  ;;  %v3181_v22 = vrot.slane %v3124_v17, %v2930_v1 }
 0x314   : > { %v1746_v61 = vmul.f32 %v3181_v22, %v3160_v27 }
 0x315   : > { %2699 = vset.pattern.permute.xlu1 %v4197_v6  ;;  %v4327_v6 = vmov 6  }
 0x316   : > { %v3173_v5 = vpop.permute.xlu0 %1981  ;;  %1821 = vperm.xlu1 %2699, %v3079_v44   ;;  %1584 = vrot.lane.b32.xlu0 %v1566_v19, %s2774_s12  ;;  %v3177_v32 = vpop.permute.xlu1 %2161  ;;  %v3192_v19 = vrot.slane %v3124_v17, %v2932_v3 }
 0x317   : > { %4325 = vst [vmem:[#allocation30_spill] sm:$0xff] %v3173_v5  ;;  %4326 = vst [vmem:[#allocation31_spill] sm:$0xff] %v3177_v32 }
 0x318   : > { %v1926_v57 = vmul.f32 %v3192_v19, %v3163_v62 }
 0x31a   : > { %2700 = vset.pattern.permute.xlu1 %v4327_v6  ;;  %1764 = vrot.lane.b32.xlu0 %v1746_v61, %s2774_s12 }
 0x31b   : > { %v3194_v32 = vpop.permute.xlu0 %1073  ;;  %2001 = vperm.xlu1 %2700, %v3079_v44   ;;  %v3197_v58 = vpop.permute.xlu1 %886 }
 0x31c   : > { %4328 = vst [vmem:[#allocation32_spill] sm:$0xff] %v3194_v32  ;;  %v1024_v55 = vmul.f32 %v3204_v25, %v3197_v58 }
 0x31e   : > { %1944 = vrot.lane.b32.xlu0 %v1926_v57, %s2774_s12  ;;  %v3217_v57 = vrot.slane %v3186_v48, %v2922_v59 }
 0x31f   : > { %2701 = vset.pattern.permute.xlu1 %v4320_v18 }
 0x320   : > { %v3207_v46 = vpop.permute.xlu0 %1433  ;;  %911 = vperm.xlu1 %2701, %v3117_v11   ;;  %v3210_v61 = vpop.permute.xlu1 %1253  ;;  %v1204_v18 = vmul.f32 %v3217_v57, %v3194_v32 }
 0x321   : > { %4329 = vst [vmem:[#allocation33_spill] sm:$0xff] %v3207_v46  ;;  %4330 = vst [vmem:[#allocation34_spill] sm:$0xff] %v3210_v61 }
 0x322   : > { %1040 = vrot.lane.b32.xlu0 %v1024_v55, %s2774_s12  ;;  %v3230_v55 = vrot.slane %v3186_v48, %v2924_v60 }
 0x324   : > { %2702 = vset.pattern.permute.xlu1 %v4331_v54  ;;  %v1384_v51 = vmul.f32 %v3230_v55, %v3210_v61 }
 0x325   : > { %v3222_v15 = vpop.permute.xlu0 %1793  ;;  %1093 = vperm.xlu1 %2702, %v3117_v11   ;;  %v3225_v14 = vpop.permute.xlu1 %1613 }
 0x326   : > { %4332 = vst [vmem:[#allocation35_spill] sm:$0xff] %v3222_v15  ;;  %4333 = vst [vmem:[#allocation36_spill] sm:$0xff] %v3225_v14  ;;  %1220 = vrot.lane.b32.xlu0 %v1204_v18, %s2774_s12  ;;  %v3243_v18 = vrot.slane %v3186_v48, %v2928_v0 }
 0x328   : > { %v1564_v47 = vmul.f32 %v3243_v18, %v3207_v46 }
 0x329   : > { %2703 = vset.pattern.permute.xlu1 %v4334_v35  ;;  %v3251_v35 = vrot.slane %v3186_v48, %v2930_v1 }
 0x32a   : > { %v3235_v54 = vpop.permute.xlu0 %2153  ;;  %1273 = vperm.xlu1 %2703, %v3117_v11   ;;  %1400 = vrot.lane.b32.xlu0 %v1384_v51, %s2774_s12  ;;  %v3239_v49 = vpop.permute.xlu1 %1973 }
 0x32b   : > { %4335 = vst [vmem:[#allocation37_spill] sm:$0xff] %v3235_v54  ;;  %4336 = vst [vmem:[#allocation38_spill] sm:$0xff] %v3239_v49  ;;  %v1744_v38 = vmul.f32 %v3251_v35, %v3225_v14 }
 0x32e   : > { %2704 = vset.pattern.permute.xlu1 %v4337_v50  ;;  %1580 = vrot.lane.b32.xlu0 %v1564_v47, %s2774_s12  ;;  %v3263_v50 = vrot.slane %v3186_v48, %v2932_v3  ;;  %v4339_v47 = vmov 4  }
 0x32f   : > { %v3253_v54 = vpop.permute.xlu0 %1997  ;;  %1453 = vperm.xlu1 %2704, %v3117_v11   ;;  %v3256_v51 = vpop.permute.xlu1 %901 }
 0x330   : > { %4338 = vst [vmem:[#allocation39_spill] sm:$0xff] %v3253_v54  ;;  %v1924_v54 = vmul.f32 %v3263_v50, %v3222_v15 }
 0x332   : > { %1760 = vrot.lane.b32.xlu0 %v1744_v38, %s2774_s12  ;;  %v3278_v38 = vrot.slane %v2926_v63, %v2920_v56 }
 0x333   : > { %2705 = vset.pattern.permute.xlu1 %v4339_v47  ;;  %v3266_v42 = vpop.permute.xlu1 %916  ;;  %v3283_v47 = vld [vmem:[%s4174_s6] sm:$0xff] }
 0x334   : > { %v3268_v37 = vpop.permute.xlu0 %2165  ;;  %1633 = vperm.xlu1 %2705, %v3117_v11   ;;  %v990_v14 = vmul.f32 %v3008_v45, %v3266_v42  ;;  %v1030_v15 = vmul.f32 %v3278_v38, %v3266_v42 }
 0x335   : > { %4340 = vst [vmem:[#allocation40_spill] sm:$0xff] %v3268_v37  ;;  %v4341_v37 = vmov 5  }
 0x336   : > { %1940 = vrot.lane.b32.xlu0 %v1924_v54, %s2774_s12  ;;  %v998_v41 = vsub.f32 1.0, %v990_v14 }
 0x338   : > { %2706 = vset.pattern.permute.xlu1 %v4341_v37  ;;  %v3286_v46 = vpop.permute.xlu1 %1085  ;;  %v3291_v44 = vmul.f32 %v998_v41, %v3283_v47  ;;  %v3307_v37 = vrot.slane %v2926_v63, %v2922_v59 }
 0x339   : > { %v3293_v54 = vpop.permute.xlu0 %906  ;;  %1813 = vperm.xlu1 %2706, %v3117_v11  }
 0x33a   : > { %4342 = vst [vmem:[#allocation41_spill] sm:$0xff] %v3291_v44  ;;  %v3298_v56 = vmul.f32 %v3293_v54, %v3283_v47  ;;  %v3302_v14 = vmul.f32 %v3029_v53, %v3293_v54  ;;  %1052 = vrot.lane.b32.xlu0 %v1030_v15, %s2774_s12 }
 0x33c   : > { %4343 = vst [vmem:[#allocation42_spill] sm:$0xff] %v3298_v56  ;;  %4344 = vst [vmem:[#allocation43_spill] sm:$0xff] %v3302_v14  ;;  %v3309_v41 = vpop.permute.xlu1 %1097  ;;  %v2095_v14 = vrot.slane %v3124_v17, %v2934_v4  ;;  %v4348_v56 = vmov 7  }
 0x33d   : > { %4345 = vst [vmem:[#allocation44_spill] sm:$0xff] %v3309_v41  ;;  %2707 = vset.pattern.permute.xlu1 %v4327_v6  ;;  %v1210_v44 = vmul.f32 %v3307_v37, %v3309_v41  ;;  %v3326_v6 = vrot.slane %v3186_v48, %v2934_v4  ;;  %v1027_v48 = vmul.f32 %v3130_v20, %v3256_v51 }
 0x33e   : > { %v3314_v36 = vpop.permute.xlu0 %1089  ;;  %1993 = vperm.xlu1 %2707, %v3117_v11   ;;  %v2106_v15 = vmul.f32 %v2095_v14, %v3173_v5  ;;  %v3333_v11 = vrot.slane %v2926_v63, %v2924_v60 }
 0x33f   : > { %4346 = vst [vmem:[#allocation45_spill] sm:$0xff] %v3314_v36  ;;  %1232 = vrot.lane.b32.xlu0 %v1210_v44, %s2774_s12  ;;  %v2104_v44 = vmul.f32 %v3326_v6, %v3239_v49 }
 0x341   : > { %v3321_v59 = vpop.permute.xlu1 %1265 }
 0x342   : > { %4347 = vst [vmem:[#allocation46_spill] sm:$0xff] %v3321_v59  ;;  %2124 = vrot.lane.b32.xlu1 %v2106_v15, %s2774_s12 }
 0x343   : > { %v3328_v41 = vpop.permute.xlu0 %1257  ;;  %2709 = vset.pattern.permute.xlu1 %v4348_v56  ;;  %v1207_v56 = vmul.f32 %v3142_v16, %v3286_v46 }
 0x345   : > { %v3337_v17 = vpop.permute.xlu1 %1277 }
 0x346   : > { %4349 = vst [vmem:[#allocation47_spill] sm:$0xff] %v3337_v17  ;;  %v1390_v15 = vmul.f32 %v3333_v11, %v3337_v17  ;;  %2120 = vrot.lane.b32.xlu1 %v2104_v44, %s2774_s12  ;;  %v3356_v17 = vrot.slane %v2926_v63, %v2928_v0 }
 0x347   : > { %v3342_v4 = vpop.permute.xlu0 %1269 }
 0x348   : > { %4350 = vst [vmem:[#allocation48_spill] sm:$0xff] %v3342_v4  ;;  %1412 = vrot.lane.b32.xlu0 %v1390_v15, %s2774_s12  ;;  %v1387_v15 = vmul.f32 %v3155_v34, %v3321_v59 }
 0x34a   : > { %1046 = vrot.lane.b32.xlu1 %v1027_v48, %s2774_s12  ;;  %v3348_v60 = vpop.permute.xlu1 %1445 }
 0x34b   : > { %4351 = vst [vmem:[#allocation49_spill] sm:$0xff] %v3348_v60  ;;  %v1567_v0 = vmul.f32 %v3168_v28, %v3348_v60 }
 0x34c   : > { %v3352_v49 = vpop.permute.xlu0 %1449 }
 0x34d   : > { %4352 = vst [vmem:[#allocation50_spill] sm:$0xff] %v3352_v49 }
 0x34e   : > { %1226 = vrot.lane.b32.xlu1 %v1207_v56, %s2774_s12  ;;  %v3359_v44 = vpop.permute.xlu1 %1457 }
 0x34f   : > { %4353 = vst [vmem:[#allocation51_spill] sm:$0xff] %v3359_v44  ;;  %v1570_v20 = vmul.f32 %v3356_v17, %v3359_v44  ;;  %v3378_v44 = vrot.slane %v2926_v63, %v2930_v1 }
 0x351   : > { %v3365_v48 = vpop.permute.xlu0 %1617  ;;  %1592 = vrot.lane.b32.xlu0 %v1570_v20, %s2774_s12 }
 0x352   : > { %4354 = vst [vmem:[#allocation52_spill] sm:$0xff] %v3365_v48  ;;  %1406 = vrot.lane.b32.xlu1 %v1387_v15, %s2774_s12 }
 0x353   : > { %v3369_v16 = vpop.permute.xlu1 %1625 }
 0x354   : > { %4355 = vst [vmem:[#allocation53_spill] sm:$0xff] %v3369_v16  ;;  %v1747_v20 = vmul.f32 %v3181_v22, %v3369_v16  ;;  %v3399_v22 = vrot.slane %v2926_v63, %v2932_v3  ;;  %v3416_v63 = vld [vmem:[%s4174_s6 + $0x8] sm:$0xff] }
 0x355   : > { %v3373_v56 = vpop.permute.xlu0 %1629 }
 0x356   : > { %4356 = vst [vmem:[#allocation54_spill] sm:$0xff] %v3373_v56  ;;  %1586 = vrot.lane.b32.xlu1 %v1567_v0, %s2774_s12 }
 0x357   : > { %v3380_v34 = vpop.permute.xlu1 %1637 }
 0x358   : > { %4357 = vst [vmem:[#allocation55_spill] sm:$0xff] %v3380_v34  ;;  %v1750_v15 = vmul.f32 %v3378_v44, %v3380_v34 }
 0x35a   : > { %v3386_v59 = vpop.permute.xlu0 %1809  ;;  %1766 = vrot.lane.b32.xlu1 %v1747_v20, %s2774_s12  ;;  %1772 = vrot.lane.b32.xlu0 %v1750_v15, %s2774_s12 }
 0x35b   : > { %4358 = vst [vmem:[#allocation56_spill] sm:$0xff] %v3386_v59 }
 0x35c   : > { %v3390_v28 = vpop.permute.xlu1 %1805 }
 0x35d   : > { %4359 = vst [vmem:[#allocation57_spill] sm:$0xff] %v3390_v28  ;;  %v1927_v1 = vmul.f32 %v3192_v19, %v3390_v28 }
 0x35f   : > { %v3394_v0 = vpop.permute.xlu0 %1977  ;;  %1946 = vrot.lane.b32.xlu1 %v1927_v1, %s2774_s12  ;;  %v930_v1 = vmul.f32 %v3266_v42, %v3283_v47 }
 0x360   : > { %4360 = vst [vmem:[#allocation58_spill] sm:$0xff] %v3394_v0  ;;  %v3401_v34 = vpop.permute.xlu1 %1817 }
 0x361   : > { %4361 = vst [vmem:[#allocation59_spill] sm:$0xff] %v3401_v34  ;;  %v1930_v20 = vmul.f32 %v3399_v22, %v3401_v34 }
 0x363   : > { %v3405_v16 = vpop.permute.xlu0 %1989  ;;  %1952 = vrot.lane.b32.xlu1 %v1930_v20, %s2774_s12 }
 0x364   : > { %4362 = vst [vmem:[#allocation60_spill] sm:$0xff] %v3405_v16 }
 0x365   : > { %v3408_v15 = vpop.permute.xlu1 %1985 }
 0x366   : > { %4363 = vst [vmem:[#allocation61_spill] sm:$0xff] %v3408_v15  ;;  %v2107_v19 = vmul.f32 %v2095_v14, %v3408_v15  ;;  %v1028_v14 = vmul.f32 %v2937_v7, %v3293_v54  ;;  %v959_v15 = vsel %vm447_vm0, %v930_v1, 0.0  ;;  %v1385_v1 = vmul.f32 %v3230_v55, %v3328_v41 }
 0x367   : > { %v1748_v55 = vmul.f32 %v2949_v12, %v3373_v56 }
 0x368   : > { %v3418_v3 = vpop.permute.xlu0 %921  ;;  %2126 = vrot.lane.b32.xlu0 %v2107_v19, %s2774_s12 }
 0x369   : > { %v931_v34 = vmul.f32 %v3418_v3, %v3416_v63  ;;  %v3425_v20 = vmul.f32 %v3008_v45, %v3418_v3  ;;  %v1208_v45 = vmul.f32 %v2940_v8, %v3314_v36 }
 0x36a   : > { %v3429_v42 = vpop.permute.xlu1 %891 }
 0x36b   : > { %4364 = vst [vmem:[#allocation62_spill] sm:$0xff] %v3425_v20  ;;  %v960_v28 = vsel %vm447_vm0, %v931_v34, 0.0  ;;  %v1025_v60 = vmul.f32 %v3204_v25, %v3429_v42  ;;  %v1388_v25 = vmul.f32 %v2943_v9, %v3342_v4 }
 0x36c   : > { %v3435_v19 = vadd.f32 %v960_v28, %v959_v15  ;;  %1048 = vrot.lane.b32.xlu0 %v1028_v14, %s2774_s12 }
 0x36d   : > { %v3438_v16 = vpop.permute.xlu0 %1281  ;;  %1042 = vrot.lane.b32.xlu1 %v1025_v60, %s2774_s12  ;;  %v986_v60 = vmul.f32 %v2966_v21, %v3132_v52 }
 0x36e   : > { %4365 = vst [vmem:[#allocation63_spill] sm:$0xff] %v3438_v16 }
 0x36f   : > { %v3443_v54 = vpop.permute.xlu1 %1077 }
 0x370   : > { %4366 = vst [vmem:[#allocation64_spill] sm:$0xff] %v3443_v54  ;;  %1228 = vrot.lane.b32.xlu0 %v1208_v45, %s2774_s12  ;;  %v1205_v34 = vmul.f32 %v3217_v57, %v3443_v54  ;;  %v1568_v57 = vmul.f32 %v2946_v10, %v3352_v49  ;;  %v994_v45 = vsub.f32 1.0, %v986_v60  ;;  %v1745_v60 = vmul.f32 %v3251_v35, %v3365_v48 }
 0x372   : > { %v3450_v28 = vpop.permute.xlu0 %1641  ;;  %1222 = vrot.lane.b32.xlu1 %v1205_v34, %s2774_s12 }
 0x374   : > { %1408 = vrot.lane.b32.xlu0 %v1388_v25, %s2774_s12  ;;  %v3456_v15 = vpop.permute.xlu1 %1437  ;;  %v1166_v25 = vmul.f32 %v2969_v23, %v3134_v39 }
 0x375   : > { %4367 = vst [vmem:[#allocation65_spill] sm:$0xff] %v3456_v15  ;;  %v1565_v34 = vmul.f32 %v3243_v18, %v3456_v15  ;;  %v2105_v15 = vmul.f32 %v3326_v6, %v3394_v0 }
 0x376   : > { %1402 = vrot.lane.b32.xlu1 %v1385_v1, %s2774_s12  ;;  %v1002_v1 = vmul.f32 %v994_v45, %v3283_v47  ;;  %v1174_v18 = vsub.f32 1.0, %v1166_v25 }
 0x377   : > { %v3463_v14 = vpop.permute.xlu0 %2173 }
 0x378   : > { %4368 = vst [vmem:[#allocation66_spill] sm:$0xff] %v3463_v14  ;;  %1588 = vrot.lane.b32.xlu0 %v1568_v57, %s2774_s12  ;;  %v1346_v14 = vmul.f32 %v2972_v24, %v3145_v26 }
 0x379   : > { %v3468_v54 = vpop.permute.xlu1 %1797 }
 0x37a   : > { %1582 = vrot.lane.b32.xlu1 %v1565_v34, %s2774_s12  ;;  %v1925_v35 = vmul.f32 %v3263_v50, %v3468_v54  ;;  %v1354_v25 = vsub.f32 1.0, %v1346_v14  ;;  %v1706_v50 = vmul.f32 %v2978_v30, %v3160_v27 }
 0x37c   : > { %v1045_v20 = vpop.permute.xlu0 %1044  ;;  %1768 = vrot.lane.b32.xlu0 %v1748_v55, %s2774_s12  ;;  %v1526_v55 = vmul.f32 %v2975_v29, %v3148_v2 }
 0x37d   : > { %v3479_v57 = vadd.f32 %v1045_v20, %v1002_v1 }
 0x37e   : > { %v3485_v39 = vpop.permute.xlu1 %2157  ;;  %1762 = vrot.lane.b32.xlu1 %v1745_v60, %s2774_s12 }
 0x37f   : > { %4369 = vst [vmem:[#allocation67_spill] sm:$0xff] %v3485_v39  ;;  %v1182_v45 = vmul.f32 %v1174_v18, %v3479_v57  ;;  %v1928_v18 = vmul.f32 %v2952_v13, %v3386_v59  ;;  %v1534_v39 = vsub.f32 1.0, %v1526_v55  ;;  %v2266_v55 = vld [vmem:[%s4175_s7 + $0x18] sm:$0xff] }
 0x380   : > { %v1225_v34 = vpop.permute.xlu0 %1224  ;;  %2122 = vrot.lane.b32.xlu0 %v2105_v15, %s2774_s12  ;;  %2615 = vmatprep.subr.mxu0 %v2266_v55 }
 0x381   : > { %v3492_v20 = vadd.f32 %v1225_v34, %v1182_v45  ;;  %2629 = vmatprep.subr.mxu1 %v2266_v55  ;;  %2616 = vmatpush3.msra.mxu0 %v2266_v55 }
 0x382   : > { %v3496_v1 = vpop.permute.xlu1 %2169  ;;  %1942 = vrot.lane.b32.xlu1 %v1925_v35, %s2774_s12  ;;  %v1031_v35 = vmul.f32 %v3278_v38, %v3418_v3  ;;  %v2265_v38 = vld [vmem:[%s4175_s7 + $0x10] sm:$0xff]  ;;  %2633 = vmatpush3.msra.mxu1 %v2266_v55 }
 0x383   : > { %4370 = vst [vmem:[#allocation68_spill] sm:$0xff] %v3496_v1  ;;  %v1362_v6 = vmul.f32 %v1354_v25, %v3492_v20  ;;  %v1714_v1 = vsub.f32 1.0, %v1706_v50  ;;  %2617 = vmatprep.subr.mxu0 %v2265_v38  ;;  %2630 = vmatprep.subr.mxu1 %v2265_v38 }
 0x384   : > { %v1405_v60 = vpop.permute.xlu0 %1404  ;;  %2618 = vmatpush3.msra.mxu0 %v2265_v38  ;;  %2634 = vmatpush3.msra.mxu1 %v2265_v38  ;;  %v1164_v38 = vmul.f32 %v2996_v40, %v3194_v32 }
 0x385   : > { %v3502_v15 = vadd.f32 %v1405_v60, %v1362_v6  ;;  %v1886_v6 = vmul.f32 %v2981_v31, %v3163_v62  ;;  %v984_v60 = vmul.f32 %v3005_v43, %v3197_v58 }
 0x386   : > { %1948 = vrot.lane.b32.xlu1 %v1928_v18, %s2774_s12 }
 0x387   : > { %v3507_v14 = vpop.permute.xlu1 %1101  ;;  %v1542_v45 = vmul.f32 %v1534_v39, %v3502_v15  ;;  %v992_v62 = vsub.f32 1.0, %v984_v60 }
 0x388   : > { %v1585_v34 = vpop.permute.xlu0 %1584  ;;  %v1211_v50 = vmul.f32 %v3307_v37, %v3507_v14  ;;  %v2263_v37 = vld [vmem:[%s4175_s7] sm:$0xff] }
 0x389   : > { %v3512_v25 = vadd.f32 %v1585_v34, %v1542_v45  ;;  %v1894_v34 = vsub.f32 1.0, %v1886_v6 }
 0x38a   : > { %1054 = vrot.lane.b32.xlu1 %v1031_v35, %s2774_s12  ;;  %v2264_v35 = vld [vmem:[%s4175_s7 + $0x8] sm:$0xff] }
 0x38b   : > { %v1722_v39 = vmul.f32 %v1714_v1, %v3512_v25  ;;  %v2066_v1 = vmul.f32 %v2984_v33, %v3173_v5  ;;  %2619 = vmatprep.subr.mxu0 %v2264_v35  ;;  %2631 = vmatprep.subr.mxu1 %v2264_v35 }
 0x38c   : > { %v1765_v3 = vpop.permute.xlu0 %1764  ;;  %v3526_v18 = vpop.permute.xlu1 %1461  ;;  %2620 = vmatpush3.msra.mxu0 %v2264_v35  ;;  %2635 = vmatpush3.msra.mxu1 %v2264_v35  ;;  %v1172_v35 = vsub.f32 1.0, %v1164_v38  ;;  %v4381_v38 = vld [vmem:[#allocation12_spill] sm:$0xff] }
 0x38d   : > { %4371 = vst [vmem:[#allocation69_spill] sm:$0xff] %v3526_v18  ;;  %v3530_v45 = vadd.f32 %v1765_v3, %v1722_v39  ;;  %2621 = vmatprep.subr.mxu0 %v2263_v37  ;;  %v1391_v39 = vmul.f32 %v3333_v11, %v3438_v16  ;;  %2632 = vmatprep.subr.mxu1 %v2263_v37 }
 0x38e   : > { %1234 = vrot.lane.b32.xlu1 %v1211_v50, %s2774_s12  ;;  %v2074_v50 = vsub.f32 1.0, %v2066_v1  ;;  %2622 = vmatpush3.msra.mxu0 %v2263_v37  ;;  %v1571_v1 = vmul.f32 %v3356_v17, %v3526_v18 }
 0x38f   : > { %4372 = vst [vmem:[#allocation70_spill] sm:$0xff] %v3530_v45  ;;  %v1902_v55 = vmul.f32 %v1894_v34, %v3530_v45  ;;  %v1000_v34 = vmul.f32 %v992_v62, %v3283_v47  ;;  %2636 = vmatpush3.msra.mxu1 %v2263_v37  ;;  %v4378_v37 = vld [vmem:[#allocation27_spill] sm:$0xff]  ;;  %v4391_v45 = vld [vmem:[#allocation13_spill] sm:$0xff] }
 0x390   : > { %v1945_v6 = vpop.permute.xlu0 %1944 }
 0x391   : > { %v3544_v3 = vadd.f32 %v1945_v6, %v1902_v55  ;;  %v3546_v5 = vpop.permute.xlu1 %1821 }
 0x392   : > { %4374 = vst [vmem:[#allocation72_spill] sm:$0xff] %v3546_v5  ;;  %v1931_v60 = vmul.f32 %v3399_v22, %v3546_v5  ;;  %1414 = vrot.lane.b32.xlu1 %v1391_v39, %s2774_s12  ;;  %v4377_v22 = vld [vmem:[#allocation9_spill] sm:$0xff] }
 0x393   : > { %4373 = vst [vmem:[#allocation71_spill] sm:$0xff] %v3544_v3  ;;  %v3555_v11 = vmul.f32 %v2074_v50, %v3544_v3  ;;  %v1344_v32 = vmul.f32 %v4377_v22, %v3210_v61  ;;  %v1751_v50 = vmul.f32 %v3378_v44, %v3450_v28  ;;  %v927_v44 = vmul.f32 %v3256_v51, %v3416_v63  ;;  %v4386_v3 = vld [vmem:[#allocation42_spill] sm:$0xff] }
 0x394   : > { %v1041_v55 = vpop.permute.xlu0 %1040  ;;  %1954 = vrot.lane.b32.xlu0 %v1931_v60, %s2774_s12 }
 0x395   : > { %4375 = vst [vmem:[#allocation73_spill] sm:$0xff] %v3555_v11  ;;  %v3560_v6 = vadd.f32 %v1041_v55, %v1000_v34  ;;  %v1352_v17 = vsub.f32 1.0, %v1344_v32  ;;  %v4380_v34 = vld [vmem:[#allocation33_spill] sm:$0xff] }
 0x396   : > { %v3564_v5 = vpop.permute.xlu1 %2001  ;;  %1594 = vrot.lane.b32.xlu1 %v1571_v1, %s2774_s12  ;;  %v1524_v55 = vmul.f32 %v4381_v38, %v4380_v34  ;;  %v4385_v34 = vld [vmem:[#allocation10_spill] sm:$0xff] }
 0x397   : > { %4376 = vst [vmem:[#allocation74_spill] sm:$0xff] %v3560_v6  ;;  %v1180_v62 = vmul.f32 %v1172_v35, %v3560_v6 }
 0x398   : > { %v1221_v39 = vpop.permute.xlu0 %1220  ;;  %2181 = vperm.xlu0 %2708, %v4378_v37  }
 0x399   : > { %v3571_v60 = vadd.f32 %v1221_v39, %v1180_v62  ;;  %v1532_v62 = vsub.f32 1.0, %v1524_v55  ;;  %v4384_v39 = vld [vmem:[#allocation36_spill] sm:$0xff] }
 0x39a   : > { %1774 = vrot.lane.b32.xlu1 %v1751_v50, %s2774_s12  ;;  %v1704_v50 = vmul.f32 %v4385_v34, %v4384_v39 }
 0x39b   : > { %4379 = vst [vmem:[#allocation9_spill] sm:$0xff] %v3571_v60  ;;  %v912_v61 = vpop.permute.xlu1 %911  ;;  %v1360_v11 = vmul.f32 %v1352_v17, %v3571_v60  ;;  %v950_v17 = vsel %vm447_vm0, %v4386_v3, 0.0  ;;  %v4390_v3 = vld [vmem:[#allocation35_spill] sm:$0xff] }
 0x39c   : > { %v929_v1 = vmul.f32 %v912_v61, %v3416_v63  ;;  %v3579_v35 = vmul.f32 %v3029_v53, %v912_v61  ;;  %v1029_v37 = vmul.f32 %v2937_v7, %v912_v61  ;;  %v1401_v6 = vpop.permute.xlu0 %1400  ;;  %v926_v53 = vmul.f32 %v3132_v52, %v3283_v47 }
 0x39d   : > { %v3584_v32 = vadd.f32 %v1401_v6, %v1360_v11  ;;  %v942_v6 = vsel %vm447_vm0, %v927_v44, 0.0  ;;  %v1712_v39 = vsub.f32 1.0, %v1704_v50 }
 0x39e   : > { %4382 = vst [vmem:[#allocation27_spill] sm:$0xff] %v3579_v35  ;;  %v951_v60 = vsel %vm447_vm0, %v929_v1, 0.0  ;;  %1050 = vrot.lane.b32.xlu1 %v1029_v37, %s2774_s12  ;;  %v1884_v1 = vmul.f32 %v4391_v45, %v4390_v3  ;;  %v4395_v3 = vld [vmem:[#allocation11_spill] sm:$0xff] }
 0x39f   : > { %4383 = vst [vmem:[#allocation12_spill] sm:$0xff] %v3584_v32  ;;  %v3593_v35 = vadd.f32 %v951_v60, %v950_v17  ;;  %v1540_v7 = vmul.f32 %v1532_v62, %v3584_v32  ;;  %v941_v60 = vsel %vm447_vm0, %v926_v53, 0.0 }
 0x3a0   : > { %v1581_v61 = vpop.permute.xlu0 %1580  ;;  %v3597_v11 = vpop.permute.xlu1 %1093  ;;  %v943_v17 = vadd.f32 %v942_v6, %v941_v60  ;;  %v4397_v6 = vld [vmem:[#allocation44_spill] sm:$0xff] }
 0x3a1   : > { %4387 = vst [vmem:[#allocation10_spill] sm:$0xff] %v3593_v35  ;;  %4388 = vst [vmem:[#allocation42_spill] sm:$0xff] %v3597_v11  ;;  %v3600_v55 = vadd.f32 %v1581_v61, %v1540_v7  ;;  %v1209_v52 = vmul.f32 %v2940_v8, %v3597_v11  ;;  %v1892_v7 = vsub.f32 1.0, %v1884_v1  ;;  %v4394_v61 = vld [vmem:[#allocation38_spill] sm:$0xff] }
 0x3a2   : > { %v2064_v32 = vmul.f32 %v4395_v3, %v4394_v61  ;;  %v944_v53 = vrot.slane %v943_v17, 4 }
 0x3a3   : > { %4389 = vst [vmem:[#allocation75_spill] sm:$0xff] %v3600_v55  ;;  %v1720_v37 = vmul.f32 %v1712_v39, %v3600_v55  ;;  %1230 = vrot.lane.b32.xlu1 %v1209_v52, %s2774_s12  ;;  %v4398_v52 = vld [vmem:[#allocation16_spill] sm:$0xff] }
 0x3a4   : > { %v1761_v62 = vpop.permute.xlu0 %1760  ;;  %v1170_v60 = vmul.f32 %v4398_v52, %v4397_v6  ;;  %v2072_v1 = vsub.f32 1.0, %v2064_v32 }
 0x3a5   : > { %v3609_v35 = vadd.f32 %v1761_v62, %v1720_v37  ;;  %v3611_v44 = vpop.permute.xlu1 %1273  ;;  %v945_v62 = vadd.f32 %v944_v53, %v943_v17  ;;  %v925_v17 = vmul.f32 %v3429_v42, %v3416_v63 }
 0x3a6   : > { %4393 = vst [vmem:[#allocation76_spill] sm:$0xff] %v3611_v44  ;;  %v1389_v50 = vmul.f32 %v2943_v9, %v3611_v44 }
 0x3a7   : > { %4392 = vst [vmem:[#allocation13_spill] sm:$0xff] %v3609_v35  ;;  %v1900_v8 = vmul.f32 %v1892_v7, %v3609_v35  ;;  %v4401_v7 = vld [vmem:[#allocation41_spill] sm:$0xff]  ;;  %v946_v18 = vrot.slane %v945_v62, 2 }
 0x3a8   : > { %v1941_v11 = vpop.permute.xlu0 %1940  ;;  %1410 = vrot.lane.b32.xlu1 %v1389_v50, %s2774_s12  ;;  %v4403_v50 = vld [vmem:[#allocation47_spill] sm:$0xff] }
 0x3a9   : > { %v3619_v39 = vadd.f32 %v1941_v11, %v1900_v8  ;;  %v1178_v11 = vsub.f32 1.0, %v1170_v60  ;;  %v4404_v8 = vld [vmem:[#allocation14_spill] sm:$0xff] }
 0x3aa   : > { %v3623_v37 = vpop.permute.xlu1 %1453  ;;  %v1350_v6 = vmul.f32 %v4404_v8, %v4403_v50  ;;  %v4415_v50 = vld [vmem:[#allocation60_spill] sm:$0xff] }
 0x3ab   : > { %4396 = vst [vmem:[#allocation11_spill] sm:$0xff] %v3619_v39  ;;  %4399 = vst [vmem:[#allocation16_spill] sm:$0xff] %v3623_v37  ;;  %v1569_v9 = vmul.f32 %v2946_v10, %v3623_v37  ;;  %v3628_v61 = vmul.f32 %v2072_v1, %v3619_v39  ;;  %v987_v1 = vmul.f32 %v2966_v21, %v3256_v51  ;;  %v4409_v37 = vld [vmem:[#allocation19_spill] sm:$0xff]  ;;  %v4421_v39 = vld [vmem:[#allocation46_spill] sm:$0xff] }
 0x3ac   : > { %v1053_v44 = vpop.permute.xlu0 %1052  ;;  %v1358_v60 = vsub.f32 1.0, %v1350_v6  ;;  %v4411_v6 = vld [vmem:[#allocation26_spill] sm:$0xff] }
 0x3ad   : > { %4400 = vst [vmem:[#allocation77_spill] sm:$0xff] %v3628_v61  ;;  %v3631_v35 = vadd.f32 %v1053_v44, %v4401_v7  ;;  %1590 = vrot.lane.b32.xlu1 %v1569_v9, %s2774_s12  ;;  %v924_v9 = vmul.f32 %v3197_v58, %v3283_v47  ;;  %v947_v7 = vadd.f32 %v946_v18, %v945_v62  ;;  %v995_v21 = vsub.f32 1.0, %v987_v1  ;;  %v4412_v18 = vld [vmem:[#allocation51_spill] sm:$0xff]  ;;  %v4413_v62 = vld [vmem:[#allocation17_spill] sm:$0xff]  ;;  %v4418_v1 = vld [vmem:[#allocation8_spill] sm:$0xff] }
 0x3ae   : > { %v3663_v58 = vmul.f32 %v2969_v23, %v3286_v46 }
 0x3af   : > { %4402 = vst [vmem:[#allocation41_spill] sm:$0xff] %v3631_v35  ;;  %v3636_v55 = vpop.permute.xlu1 %1633  ;;  %v1186_v32 = vmul.f32 %v1178_v11, %v3631_v35  ;;  %v932_v51 = vsel %vm447_vm0, %v924_v9, 0.0  ;;  %v4419_v9 = vld [vmem:[#allocation20_spill] sm:$0xff] }
 0x3b0   : > { %4405 = vst [vmem:[#allocation14_spill] sm:$0xff] %v3636_v55  ;;  %v1749_v10 = vmul.f32 %v2949_v12, %v3636_v55  ;;  %v933_v55 = vsel %vm447_vm0, %v925_v17, 0.0  ;;  %v1530_v17 = vmul.f32 %v4413_v62, %v4412_v18 }
 0x3b1   : > { %v1233_v53 = vpop.permute.xlu0 %1232  ;;  %v934_v61 = vadd.f32 %v933_v55, %v932_v51  ;;  %v962_v51 = vrot.slane %v3435_v19, 4 }
 0x3b2   : > { %v3643_v44 = vadd.f32 %v1233_v53, %v1186_v32  ;;  %1770 = vrot.lane.b32.xlu1 %v1749_v10, %s2774_s12  ;;  %v4408_v53 = vld [vmem:[#allocation39_spill] sm:$0xff] }
 0x3b3   : > { %v3658_v10 = vmul.f32 %v4409_v37, %v4408_v53  ;;  %v2110_v23 = vmul.f32 %v4418_v1, %v4408_v53  ;;  %v1538_v53 = vsub.f32 1.0, %v1530_v17  ;;  %v4423_v17 = vld [vmem:[#allocation22_spill] sm:$0xff] }
 0x3b4   : > { %4406 = vst [vmem:[#allocation78_spill] sm:$0xff] %v3643_v44  ;;  %v3650_v11 = vpop.permute.xlu1 %1813  ;;  %v1366_v12 = vmul.f32 %v1358_v60, %v3643_v44  ;;  %v948_v60 = vrot.slane %v947_v7, 1  ;;  %v4416_v44 = vld [vmem:[#allocation7_spill] sm:$0xff] }
 0x3b5   : > { %4407 = vst [vmem:[#allocation79_spill] sm:$0xff] %v3650_v11  ;;  %v1929_v32 = vmul.f32 %v2952_v13, %v3650_v11  ;;  %4410 = vst [vmem:[#allocation80_spill] sm:$0xff] %v3658_v10  ;;  %v4414_v13 = vld [vmem:[#allocation43_spill] sm:$0xff]  ;;  %v2108_v35 = vmul.f32 %v4416_v44, %v4415_v50  ;;  %v3691_v10 = vmul.f32 %v2972_v24, %v4421_v39 }
 0x3b6   : > { %2177 = vperm.xlu1 %2709, %v4411_v6   ;;  %v996_v11 = vsub.f32 1.0, %v4414_v13  ;;  %v1003_v13 = vmul.f32 %v995_v21, %v3416_v63  ;;  %v3709_v24 = vmul.f32 %v4423_v17, %v3352_v49  ;;  %v4428_v49 = vld [vmem:[#allocation53_spill] sm:$0xff]  ;;  %v4429_v17 = vld [vmem:[#allocation55_spill] sm:$0xff] }
 0x3b7   : > { %1950 = vrot.lane.b32.xlu0 %v1929_v32, %s2774_s12  ;;  %v3679_v32 = vmul.f32 %v4419_v9, %v3314_v36  ;;  %v3693_v36 = vadd.f32 %v948_v60, %v947_v7 }
 0x3b8   : > { %v3701_v21 = vmul.f32 %v996_v11, %v3283_v47  ;;  %v3720_v47 = vmul.f32 %v4385_v34, %v3365_v48  ;;  %v4426_v11 = vld [vmem:[#allocation23_spill] sm:$0xff] }
 0x3b9   : > { %v3672_v6 = vpop.permute.xlu1 %1993  ;;  %v4430_v34 = vld [vmem:[#allocation15_spill] sm:$0xff] }
 0x3ba   : > { %4417 = vst [vmem:[#allocation26_spill] sm:$0xff] %v3672_v6  ;;  %v2109_v18 = vmul.f32 %v4416_v44, %v3672_v6  ;;  %v1413_v37 = vpop.permute.xlu0 %1412  ;;  %2128 = vrot.lane.b32.xlu1 %v2108_v35, %s2774_s12  ;;  %v3697_v44 = vmul.f32 %v4377_v22, %v3328_v41  ;;  %v935_v35 = vrot.slane %v934_v61, 4  ;;  %v4424_v22 = vld [vmem:[#allocation49_spill] sm:$0xff]  ;;  %4425 = vst [vmem:[#allocation7_spill] sm:$0xff] %v3720_v47 }
 0x3bb   : > { %v3687_v62 = vadd.f32 %v1413_v37, %v1366_v12  ;;  %v4422_v37 = vld [vmem:[#allocation21_spill] sm:$0xff]  ;;  %v3716_v55 = vmul.f32 %v2975_v29, %v4424_v22  ;;  %v2111_v6 = vmul.f32 %v4418_v1, %v3564_v5  ;;  %v3752_v29 = vmul.f32 %v4395_v3, %v3394_v0 }
 0x3bc   : > { %2130 = vrot.lane.b32.xlu0 %v2109_v18, %s2774_s12  ;;  %v3705_v12 = vmul.f32 %v4422_v37, %v3342_v4  ;;  %v3724_v18 = vmul.f32 %v4426_v11, %v3373_v56  ;;  %v963_v4 = vadd.f32 %v962_v51, %v3435_v19  ;;  %v4431_v11 = vld [vmem:[#allocation24_spill] sm:$0xff]  ;;  %v4437_v19 = vld [vmem:[#allocation59_spill] sm:$0xff]  ;;  %v4438_v51 = vld [vmem:[#allocation18_spill] sm:$0xff]  ;;  %v3798_v48 = vmul.f32 %v4430_v34, %v3450_v28 }
 0x3bd   : > { %4420 = vst [vmem:[#allocation43_spill] sm:$0xff] %v3687_v62  ;;  %v3711_v7 = vpop.permute.xlu1 %2124  ;;  %v1546_v60 = vmul.f32 %v1538_v53, %v3687_v62  ;;  %v3731_v53 = vmul.f32 %v2978_v30, %v4428_v49  ;;  %v1710_v62 = vmul.f32 %v4430_v34, %v4429_v17  ;;  %v3741_v1 = vmul.f32 %v4431_v11, %v3386_v59  ;;  %v4433_v30 = vld [vmem:[#allocation57_spill] sm:$0xff] }
 0x3be   : > { %4427 = vst [vmem:[#allocation8_spill] sm:$0xff] %v3724_v18  ;;  %2132 = vrot.lane.b32.xlu1 %v2110_v23, %s2774_s12  ;;  %v936_v23 = vadd.f32 %v935_v35, %v934_v61  ;;  %v3746_v9 = vmul.f32 %v2981_v31, %v4433_v30  ;;  %4434 = vst [vmem:[#allocation49_spill] sm:$0xff] %v3752_v29  ;;  %v4436_v31 = vld [vmem:[#allocation4_spill] sm:$0xff]  ;;  %v1890_v59 = vmul.f32 %v4438_v51, %v4437_v19  ;;  %v4439_v3 = vld [vmem:[#allocation25_spill] sm:$0xff] }
 0x3bf   : > { %4432 = vst [vmem:[#allocation46_spill] sm:$0xff] %v3741_v1  ;;  %v3766_v11 = vmul.f32 %v4439_v3, %v4415_v50  ;;  %v964_v17 = vrot.slane %v963_v4, 2  ;;  %v1718_v37 = vsub.f32 1.0, %v1710_v62  ;;  %v985_v61 = vmul.f32 %v3005_v43, %v3429_v42  ;;  %v4441_v50 = vld [vmem:[#allocation62_spill] sm:$0xff]  ;;  %v4442_v43 = vld [vmem:[#allocation61_spill] sm:$0xff] }
 0x3c0   : > { %2134 = vrot.lane.b32.xlu0 %v2111_v6, %s2774_s12  ;;  %v999_v3 = vsub.f32 1.0, %v4441_v50  ;;  %v3780_v62 = vmul.f32 %v4404_v8, %v3438_v16  ;;  %v3784_v42 = vmul.f32 %v2984_v33, %v4442_v43  ;;  %v1898_v35 = vsub.f32 1.0, %v1890_v59  ;;  %v4445_v8 = vld [vmem:[#allocation64_spill] sm:$0xff] }
 0x3c1   : > { %v3754_v56 = vpop.permute.xlu1 %2120  ;;  %v965_v29 = vadd.f32 %v964_v17, %v963_v4  ;;  %v3794_v16 = vmul.f32 %v2996_v40, %v4445_v8  ;;  %v993_v1 = vsub.f32 1.0, %v985_v61  ;;  %v4447_v59 = vsub.f32 1.0, %v3663_v58  ;;  %v4448_v17 = vld [vmem:[#allocation65_spill] sm:$0xff] }
 0x3c2   : > { %4435 = vst [vmem:[#allocation53_spill] sm:$0xff] %v3754_v56  ;;  %2271 = vrot.lane.b32.xlu1 %v4436_v31, %s2775_s24  ;;  %v937_v56 = vrot.slane %v936_v23, 2  ;;  %v4440_v31 = vld [vmem:[#allocation3_spill] sm:$0xff]  ;;  %v3808_v40 = vmul.f32 %v4381_v38, %v4448_v17  ;;  %v3812_v34 = vmul.f32 %v999_v3, %v3416_v63 }
 0x3c3   : > { %v1593_v0 = vpop.permute.xlu0 %1592  ;;  %v3820_v38 = vmul.f32 %v993_v1, %v3416_v63 }
 0x3c4   : > { %v3771_v47 = vadd.f32 %v1593_v0, %v1546_v60  ;;  %2273 = vrot.lane.b32.xlu0 %v4440_v31, %s2775_s24  ;;  %v4443_v0 = vld [vmem:[#allocation28_spill] sm:$0xff]  ;;  %v4444_v31 = vld [vmem:[#allocation6_spill] sm:$0xff]  ;;  %v938_v33 = vadd.f32 %v937_v56, %v936_v23  ;;  %v1286_v23 = vmul.f32 %v3145_v26, %v3492_v20  ;;  %v3828_v26 = vmul.f32 %v4391_v45, %v3468_v54 }
 0x3c5   : > { %v1047_v18 = vpop.permute.xlu1 %1046  ;;  %v1106_v60 = vmul.f32 %v4443_v0, %v3479_v57  ;;  %v1466_v20 = vmul.f32 %v3148_v2, %v3502_v15  ;;  %v3846_v2 = vmul.f32 %v4398_v52, %v3507_v14 }
 0x3c6   : > { %v1067_v6 = vadd.f32 %v1047_v18, %v1003_v13  ;;  %2275 = vrot.lane.b32.xlu1 %v4444_v31, %s2775_s24  ;;  %v1726_v19 = vmul.f32 %v1718_v37, %v3771_v47  ;;  %v4446_v13 = vld [vmem:[#allocation5_spill] sm:$0xff] }
 0x3c8   : > { %v1107_v57 = vmul.f32 %v3286_v46, %v1067_v6  ;;  %2277 = vrot.lane.b32.xlu0 %v4446_v13, %s2775_s24  ;;  %v1183_v37 = vmul.f32 %v4447_v59, %v1067_v6  ;;  %v1121_v46 = vsel %vm447_vm0, %v1106_v60, 0.0  ;;  %v966_v6 = vrot.slane %v965_v29, 1 }
 0x3c9   : > { %v1227_v18 = vpop.permute.xlu1 %1226  ;;  %v939_v13 = vrot.slane %v938_v33, 1  ;;  %v4449_v60 = vsub.f32 1.0, %v3691_v10 }
 0x3ca   : > { %v1122_v58 = vsel %vm447_vm0, %v1107_v57, 0.0  ;;  %v1247_v61 = vadd.f32 %v1227_v18, %v1183_v37  ;;  %v3837_v10 = vadd.f32 %v966_v6, %v965_v29  ;;  %v1481_v29 = vsel %vm447_vm0, %v1466_v20, 0.0  ;;  %v4457_v18 = vld [vmem:[#allocation71_spill] sm:$0xff] }
 0x3cb   : > { %v1123_v31 = vadd.f32 %v1122_v58, %v1121_v46  ;;  %v1301_v46 = vsel %vm447_vm0, %v1286_v23, 0.0  ;;  %v3842_v59 = vadd.f32 %v939_v13, %v938_v33  ;;  %v1646_v33 = vmul.f32 %v3160_v27, %v3512_v25  ;;  %v4452_v13 = vld [vmem:[#allocation17_spill] sm:$0xff] }
 0x3cc   : > { %v1287_v3 = vmul.f32 %v4421_v39, %v1247_v61  ;;  %v1773_v4 = vpop.permute.xlu0 %1772  ;;  %v1363_v50 = vmul.f32 %v4449_v60, %v1247_v61  ;;  %v4456_v25 = vsub.f32 1.0, %v3731_v53 }
 0x3cd   : > { %v1124_v57 = vrot.slane %v1123_v31, 4  ;;  %v3832_v37 = vadd.f32 %v1773_v4, %v1726_v19  ;;  %v1407_v1 = vpop.permute.xlu1 %1406  ;;  %v4450_v19 = vsub.f32 1.0, %v3716_v55 }
 0x3ce   : > { %v1302_v39 = vsel %vm447_vm0, %v1287_v3, 0.0  ;;  %v1427_v58 = vadd.f32 %v1407_v1, %v1363_v50  ;;  %v4453_v3 = vld [vmem:[#allocation70_spill] sm:$0xff] }
 0x3cf   : > { %v1125_v61 = vadd.f32 %v1124_v57, %v1123_v31  ;;  %v1303_v60 = vadd.f32 %v1302_v39, %v1301_v46  ;;  %v3840_v45 = vmul.f32 %v1898_v35, %v3832_v37  ;;  %v4451_v31 = vld [vmem:[#allocation69_spill] sm:$0xff] }
 0x3d0   : > { %v1467_v15 = vmul.f32 %v4424_v22, %v1427_v58  ;;  %v1543_v4 = vmul.f32 %v4450_v19, %v1427_v58  ;;  %v3857_v52 = vmul.f32 %v4452_v13, %v4451_v31  ;;  %v4454_v57 = vld [vmem:[#allocation29_spill] sm:$0xff]  ;;  %v4455_v19 = vld [vmem:[#allocation72_spill] sm:$0xff] }
 0x3d1   : > { %v1126_v23 = vrot.slane %v1125_v61, 2  ;;  %v1304_v6 = vrot.slane %v1303_v60, 4  ;;  %v1587_v35 = vpop.permute.xlu1 %1586  ;;  %v1826_v1 = vmul.f32 %v4454_v57, %v4453_v3  ;;  %v3865_v50 = vmul.f32 %v4438_v51, %v4455_v19 }
 0x3d2   : > { %v1482_v22 = vsel %vm447_vm0, %v1467_v15, 0.0  ;;  %v1607_v55 = vadd.f32 %v1587_v35, %v1543_v4  ;;  %v4458_v15 = vld [vmem:[#allocation30_spill] sm:$0xff] }
 0x3d3   : > { %v1127_v46 = vadd.f32 %v1126_v23, %v1125_v61  ;;  %v1305_v20 = vadd.f32 %v1304_v6, %v1303_v60  ;;  %v1483_v39 = vadd.f32 %v1482_v22, %v1481_v29  ;;  %v2006_v4 = vmul.f32 %v4458_v15, %v4457_v18 }
 0x3d4   : > { %v1647_v27 = vmul.f32 %v4428_v49, %v1607_v55  ;;  %v1723_v13 = vmul.f32 %v4456_v25, %v1607_v55  ;;  %v1661_v60 = vsel %vm447_vm0, %v1646_v33, 0.0  ;;  %v1841_v49 = vsel %vm447_vm0, %v1826_v1, 0.0 }
 0x3d5   : > { %v1128_v35 = vrot.slane %v1127_v46, 1  ;;  %v1306_v0 = vrot.slane %v1305_v20, 2  ;;  %v1484_v3 = vrot.slane %v1483_v39, 4  ;;  %v1767_v61 = vpop.permute.xlu1 %1766  ;;  %v1899_v55 = vsub.f32 1.0, %v3865_v50 }
 0x3d6   : > { %v1662_v51 = vsel %vm447_vm0, %v1647_v27, 0.0  ;;  %v1787_v23 = vadd.f32 %v1767_v61, %v1723_v13  ;;  %v4459_v25 = vsub.f32 1.0, %v3746_v9  ;;  %v2021_v33 = vsel %vm447_vm0, %v2006_v4, 0.0  ;;  %v4460_v13 = vld [vmem:[#allocation74_spill] sm:$0xff]  ;;  %v4461_v61 = vld [vmem:[#allocation32_spill] sm:$0xff]  ;;  %v4463_v4 = vld [vmem:[#allocation19_spill] sm:$0xff] }
 0x3d7   : > { %v1307_v6 = vadd.f32 %v1306_v0, %v1305_v20  ;;  %v1485_v53 = vadd.f32 %v1484_v3, %v1483_v39  ;;  %v1663_v22 = vadd.f32 %v1662_v51, %v1661_v60  ;;  %v1129_v18 = vadd.f32 %v1128_v35, %v1127_v46  ;;  %v4462_v0 = vld [vmem:[#allocation73_spill] sm:$0xff] }
 0x3d8   : > { %v1827_v57 = vmul.f32 %v4433_v30, %v1787_v23  ;;  %v1903_v15 = vmul.f32 %v4459_v25, %v1787_v23  ;;  %v1104_v1 = vmul.f32 %v4461_v61, %v4460_v13  ;;  %v2146_v20 = vadd.f32 %v3711_v7, %v4462_v0 }
 0x3d9   : > { %v1308_v29 = vrot.slane %v1307_v6, 1  ;;  %v1486_v58 = vrot.slane %v1485_v53, 2  ;;  %v1664_v56 = vrot.slane %v1663_v22, 4  ;;  %v1947_v27 = vpop.permute.xlu1 %1946  ;;  %v3888_v51 = vmul.f32 %v4463_v4, %v3564_v5 }
 0x3da   : > { %v1842_v39 = vsel %vm447_vm0, %v1827_v57, 0.0  ;;  %v1967_v46 = vadd.f32 %v1947_v27, %v1903_v15  ;;  %v2127_v35 = vpop.permute.xlu0 %2126  ;;  %v2230_v23 = vsel %vm2228_vm2, %v3693_v36, %v1129_v18  ;;  %v4464_v7 = vsub.f32 1.0, %v3784_v42 }
 0x3db   : > { %v1309_v30 = vadd.f32 %v1308_v29, %v1307_v6  ;;  %v1487_v9 = vadd.f32 %v1486_v58, %v1485_v53  ;;  %v1665_v3 = vadd.f32 %v1664_v56, %v1663_v22  ;;  %v1843_v60 = vadd.f32 %v1842_v39, %v1841_v49  ;;  %v4465_v56 = vld [vmem:[#allocation31_spill] sm:$0xff]  ;;  %v4466_v39 = vld [vmem:[#allocation40_spill] sm:$0xff] }
 0x3dc   : > { %v2007_v25 = vmul.f32 %v4442_v43, %v1967_v46  ;;  %v2083_v13 = vmul.f32 %v4464_v7, %v1967_v46  ;;  %v2186_v49 = vmul.f32 %v4465_v56, %v2146_v20  ;;  %v1112_v0 = vsel %vm447_vm0, %v1104_v1, 0.0  ;;  %v4467_v20 = vld [vmem:[#allocation80_spill] sm:$0xff] }
 0x3dd   : > { %v2235_v57 = vsel %vm2233_vm3, %v2230_v23, %v1309_v30  ;;  %v1488_v15 = vrot.slane %v1487_v9, 1  ;;  %v1666_v27 = vrot.slane %v1665_v3, 2  ;;  %v1844_v29 = vrot.slane %v1843_v60, 4  ;;  %v1953_v58 = vpop.permute.xlu1 %1952 }
 0x3de   : > { %v2022_v6 = vsel %vm447_vm0, %v2007_v25, 0.0  ;;  %v2147_v53 = vadd.f32 %v2127_v35, %v2083_v13  ;;  %v3899_v22 = vadd.f32 %v1953_v58, %v3840_v45  ;;  %v1049_v36 = vpop.permute.xlu0 %1048  ;;  %v4468_v4 = vsub.f32 1.0, %v4467_v20 }
 0x3df   : > { %v1489_v43 = vadd.f32 %v1488_v15, %v1487_v9  ;;  %v1667_v18 = vadd.f32 %v1666_v27, %v1665_v3  ;;  %v1845_v42 = vadd.f32 %v1844_v29, %v1843_v60  ;;  %v2023_v61 = vadd.f32 %v2022_v6, %v2021_v33  ;;  %v4469_v60 = vld [vmem:[#allocation9_spill] sm:$0xff]  ;;  %v4470_v33 = vld [vmem:[#allocation34_spill] sm:$0xff] }
 0x3e0   : > { %v2187_v46 = vmul.f32 %v4466_v39, %v2147_v53  ;;  %v3904_v30 = vadd.f32 %v1049_v36, %v3701_v21  ;;  %v3909_v35 = vmul.f32 %v4468_v4, %v3899_v22  ;;  %v1284_v7 = vmul.f32 %v4470_v33, %v4469_v60 }
 0x3e1   : > { %v2240_v45 = vsel %vm2238_vm4, %v2235_v57, %v1489_v43  ;;  %v1668_v23 = vrot.slane %v1667_v18, 1  ;;  %v1846_v25 = vrot.slane %v1845_v42, 2  ;;  %v2024_v9 = vrot.slane %v2023_v61, 4  ;;  %v1043_v3 = vpop.permute.xlu1 %1042 }
 0x3e2   : > { %v2201_v1 = vsel %vm447_vm0, %v2186_v49, 0.0  ;;  %v2202_v13 = vsel %vm447_vm0, %v2187_v46, 0.0  ;;  %v1065_v21 = vadd.f32 %v1043_v3, %v3820_v38  ;;  %v1229_v15 = vpop.permute.xlu0 %1228  ;;  %v2079_v57 = vsub.f32 1.0, %v3888_v51  ;;  %v4473_v3 = vld [vmem:[#allocation27_spill] sm:$0xff] }
 0x3e3   : > { %v1669_v27 = vadd.f32 %v1668_v23, %v1667_v18  ;;  %v1847_v29 = vadd.f32 %v1846_v25, %v1845_v42  ;;  %v2025_v58 = vadd.f32 %v2024_v9, %v2023_v61  ;;  %v2203_v56 = vadd.f32 %v2202_v13, %v2201_v1 }
 0x3e4   : > { %v1105_v6 = vmul.f32 %v4445_v8, %v1065_v21  ;;  %v4471_v53 = vsub.f32 1.0, %v3679_v32  ;;  %v4472_v49 = vsub.f32 1.0, %v3794_v16  ;;  %v1292_v42 = vsel %vm447_vm0, %v1284_v7, 0.0 }
 0x3e5   : > { %v1848_v39 = vrot.slane %v1847_v29, 1  ;;  %v2026_v46 = vrot.slane %v2025_v58, 2  ;;  %v2204_v38 = vrot.slane %v2203_v56, 4  ;;  %v1223_v20 = vpop.permute.xlu1 %1222  ;;  %v2245_v18 = vsel %vm2243_vm5, %v2240_v45, %v1669_v27 }
 0x3e6   : > { %v1184_v36 = vmul.f32 %v4471_v53, %v3904_v30  ;;  %v1181_v43 = vmul.f32 %v4472_v49, %v1065_v21  ;;  %v1113_v61 = vsel %vm447_vm0, %v1105_v6, 0.0  ;;  %v1409_v23 = vpop.permute.xlu0 %1408  ;;  %v997_v60 = vsub.f32 1.0, %v4473_v3 }
 0x3e7   : > { %v1849_v32 = vadd.f32 %v1848_v39, %v1847_v29  ;;  %v2027_v25 = vadd.f32 %v2026_v46, %v2025_v58  ;;  %v2205_v9 = vadd.f32 %v2204_v38, %v2203_v56  ;;  %v1114_v16 = vadd.f32 %v1113_v61, %v1112_v0  ;;  %v4476_v58 = vld [vmem:[#allocation12_spill] sm:$0xff]  ;;  %v4477_v56 = vld [vmem:[#allocation33_spill] sm:$0xff]  ;;  %v4478_v46 = vld [vmem:[#allocation75_spill] sm:$0xff] }
 0x3e8   : > { %v3927_v4 = vadd.f32 %v1229_v15, %v1184_v36  ;;  %v1245_v8 = vadd.f32 %v1223_v20, %v1181_v43  ;;  %v4474_v45 = vsub.f32 1.0, %v3705_v12  ;;  %v4475_v7 = vsub.f32 1.0, %v3697_v44  ;;  %v4479_v38 = vld [vmem:[#allocation36_spill] sm:$0xff] }
 0x3e9   : > { %v2028_v21 = vrot.slane %v2027_v25, 1  ;;  %v2206_v15 = vrot.slane %v2205_v9, 2  ;;  %v1115_v27 = vrot.slane %v1114_v16, 4  ;;  %v1403_v6 = vpop.permute.xlu1 %1402  ;;  %v2250_v29 = vsel %vm2248_vm6, %v2245_v18, %v1849_v32 }
 0x3ea   : > { %v1285_v33 = vmul.f32 %v3328_v41, %v1245_v8  ;;  %v1364_v1 = vmul.f32 %v4474_v45, %v3927_v4  ;;  %v1361_v13 = vmul.f32 %v4475_v7, %v1245_v8  ;;  %v1464_v0 = vmul.f32 %v4477_v56, %v4476_v58  ;;  %v1589_v49 = vpop.permute.xlu0 %1588  ;;  %v4483_v58 = vld [vmem:[#allocation8_spill] sm:$0xff] }
 0x3eb   : > { %v2029_v12 = vadd.f32 %v2028_v21, %v2027_v25  ;;  %v2207_v43 = vadd.f32 %v2206_v15, %v2205_v9  ;;  %v1116_v39 = vadd.f32 %v1115_v27, %v1114_v16  ;;  %v1644_v20 = vmul.f32 %v4479_v38, %v4478_v46  ;;  %v4482_v27 = vld [vmem:[#allocation52_spill] sm:$0xff] }
 0x3ec   : > { %v1293_v53 = vsel %vm447_vm0, %v1285_v33, 0.0  ;;  %v3940_v36 = vadd.f32 %v1409_v23, %v1364_v1  ;;  %v1425_v41 = vadd.f32 %v1403_v6, %v1361_v13  ;;  %v4480_v18 = vsub.f32 1.0, %v3709_v24 }
 0x3ed   : > { %v1294_v44 = vadd.f32 %v1293_v53, %v1292_v42  ;;  %v4481_v32 = vsub.f32 1.0, %v3808_v40  ;;  %v2208_v23 = vrot.slane %v2207_v43, 1  ;;  %v1117_v33 = vrot.slane %v1116_v39, 2  ;;  %v1583_v1 = vpop.permute.xlu1 %1582  ;;  %v4485_v53 = vld [vmem:[#allocation7_spill] sm:$0xff] }
 0x3ee   : > { %v1465_v61 = vmul.f32 %v4448_v17, %v1425_v41  ;;  %v1544_v8 = vmul.f32 %v4480_v18, %v3940_v36  ;;  %v2255_v25 = vsel %vm2253_vm7, %v2250_v29, %v2029_v12  ;;  %v1472_v42 = vsel %vm447_vm0, %v1464_v0, 0.0  ;;  %v1769_v15 = vpop.permute.xlu0 %1768 }
 0x3ef   : > { %v1541_v3 = vmul.f32 %v4481_v32, %v1425_v41  ;;  %v1295_v45 = vrot.slane %v1294_v44, 4  ;;  %v2209_v7 = vadd.f32 %v2208_v23, %v2207_v43  ;;  %v1118_v13 = vadd.f32 %v1117_v33, %v1116_v39  ;;  %v4487_v39 = vld [vmem:[#allocation13_spill] sm:$0xff]  ;;  %v4489_v32 = vld [vmem:[#allocation11_spill] sm:$0xff] }
 0x3f0   : > { %v1473_v9 = vsel %vm447_vm0, %v1465_v61, 0.0  ;;  %v3953_v16 = vadd.f32 %v1589_v49, %v1544_v8  ;;  %v1652_v40 = vsel %vm447_vm0, %v1644_v20, 0.0  ;;  %v4484_v56 = vsub.f32 1.0, %v4483_v58 }
 0x3f1   : > { %v1605_v17 = vadd.f32 %v1583_v1, %v1541_v3  ;;  %v1296_v24 = vadd.f32 %v1295_v45, %v1294_v44  ;;  %v1474_v21 = vadd.f32 %v1473_v9, %v1472_v42  ;;  %v4486_v0 = vsub.f32 1.0, %v4485_v53  ;;  %v1763_v38 = vpop.permute.xlu1 %1762  ;;  %v4488_v44 = vld [vmem:[#allocation35_spill] sm:$0xff]  ;;  %v4490_v3 = vld [vmem:[#allocation38_spill] sm:$0xff] }
 0x3f2   : > { %v1724_v29 = vmul.f32 %v4484_v56, %v3953_v16  ;;  %v1119_v12 = vrot.slane %v1118_v13, 1  ;;  %v3963_v43 = vsel %vm2258_vm8, %v2255_v25, %v2209_v7  ;;  %v1824_v61 = vmul.f32 %v4488_v44, %v4487_v39  ;;  %v4492_v7 = vld [vmem:[#allocation46_spill] sm:$0xff] }
 0x3f3   : > { %v1645_v6 = vmul.f32 %v4482_v27, %v1605_v17  ;;  %v1721_v41 = vmul.f32 %v4486_v0, %v1605_v17  ;;  %v1297_v49 = vrot.slane %v1296_v24, 2  ;;  %v1475_v46 = vrot.slane %v1474_v21, 4  ;;  %v4496_v39 = vld [vmem:[#allocation58_spill] sm:$0xff] }
 0x3f4   : > { %v3968_v18 = vadd.f32 %v1769_v15, %v1724_v29  ;;  %v2004_v23 = vmul.f32 %v4490_v3, %v4489_v32  ;;  %v1120_v42 = vadd.f32 %v1119_v12, %v1118_v13  ;;  %v4491_v25 = vsub.f32 1.0, %v3828_v26  ;;  %v4495_v13 = vld [vmem:[#allocation53_spill] sm:$0xff]  ;;  %v2123_v3 = vpop.permute.xlu0 %2122 }
 0x3f5   : > { %v1653_v20 = vsel %vm447_vm0, %v1645_v6, 0.0  ;;  %v1785_v8 = vadd.f32 %v1763_v38, %v1721_v41  ;;  %v1298_v33 = vadd.f32 %v1297_v49, %v1296_v24  ;;  %v1476_v45 = vadd.f32 %v1475_v46, %v1474_v21  ;;  %v1943_v29 = vpop.permute.xlu1 %1942  ;;  %v4494_v21 = vld [vmem:[#allocation77_spill] sm:$0xff] }
 0x3f6   : > { %v1654_v1 = vadd.f32 %v1653_v20, %v1652_v40  ;;  %v4493_v27 = vsub.f32 1.0, %v4492_v7  ;;  %v3979_v53 = vmul.f32 %v997_v60, %v3416_v63  ;;  %v1832_v24 = vsel %vm447_vm0, %v1824_v61, 0.0  ;;  %v4497_v60 = vld [vmem:[#allocation49_spill] sm:$0xff] }
 0x3f7   : > { %v1825_v9 = vmul.f32 %v3468_v54, %v1785_v8  ;;  %v1901_v17 = vmul.f32 %v4491_v25, %v1785_v8  ;;  %v1299_v6 = vrot.slane %v1298_v33, 1  ;;  %v1477_v15 = vrot.slane %v1476_v45, 2 }
 0x3f8   : > { %v1904_v58 = vmul.f32 %v4493_v27, %v3968_v18  ;;  %v1655_v56 = vrot.slane %v1654_v1, 4  ;;  %v2144_v40 = vadd.f32 %v4495_v13, %v4494_v21  ;;  %v2012_v46 = vsel %vm447_vm0, %v2004_v23, 0.0  ;;  %v4503_v21 = vld [vmem:[#allocation67_spill] sm:$0xff] }
 0x3f9   : > { %v1833_v54 = vsel %vm447_vm0, %v1825_v9, 0.0  ;;  %v1965_v26 = vadd.f32 %v1943_v29, %v1901_v17  ;;  %v1300_v0 = vadd.f32 %v1299_v6, %v1298_v33  ;;  %v1478_v41 = vadd.f32 %v1477_v15, %v1476_v45  ;;  %v1949_v9 = vpop.permute.xlu1 %1948  ;;  %v4499_v45 = vld [vmem:[#allocation37_spill] sm:$0xff]  ;;  %v4500_v6 = vld [vmem:[#allocation10_spill] sm:$0xff]  ;;  %v4502_v29 = vld [vmem:[#allocation20_spill] sm:$0xff] }
 0x3fa   : > { %v1656_v12 = vadd.f32 %v1655_v56, %v1654_v1  ;;  %v1834_v49 = vadd.f32 %v1833_v54, %v1832_v24  ;;  %v2229_v38 = vsel %vm2228_vm2, %v3842_v59, %v1120_v42  ;;  %v4498_v44 = vsub.f32 1.0, %v4497_v60  ;;  %v4501_v56 = vld [vmem:[#allocation42_spill] sm:$0xff] }
 0x3fb   : > { %v2005_v63 = vmul.f32 %v4496_v39, %v1965_v26  ;;  %v1479_v20 = vrot.slane %v1478_v41, 1  ;;  %v2234_v33 = vsel %vm2233_vm3, %v2229_v38, %v1300_v0  ;;  %v2184_v1 = vmul.f32 %v4499_v45, %v2144_v40 }
 0x3fc   : > { %v2081_v61 = vmul.f32 %v4498_v44, %v1965_v26  ;;  %v1657_v8 = vrot.slane %v1656_v12, 2  ;;  %v1835_v32 = vrot.slane %v1834_v49, 4  ;;  %v3994_v17 = vadd.f32 %v1949_v9, %v1904_v58 }
 0x3fd   : > { %v2013_v25 = vsel %vm447_vm0, %v2005_v63, 0.0  ;;  %v1480_v59 = vadd.f32 %v1479_v20, %v1478_v41  ;;  %v953_v15 = vrot.slane %v4500_v6, 4  ;;  %v3999_v24 = vmul.f32 %v4502_v29, %v4501_v56  ;;  %v1055_v41 = vpop.permute.xlu1 %1054 }
 0x3fe   : > { %v2145_v23 = vadd.f32 %v2123_v3, %v2081_v61  ;;  %v1658_v42 = vadd.f32 %v1657_v8, %v1656_v12  ;;  %v1836_v7 = vadd.f32 %v1835_v32, %v1834_v49  ;;  %v2014_v27 = vadd.f32 %v2013_v25, %v2012_v46  ;;  %v4505_v49 = vld [vmem:[#allocation41_spill] sm:$0xff]  ;;  %v4506_v46 = vld [vmem:[#allocation44_spill] sm:$0xff] }
 0x3ff   : > { %v4504_v40 = vsub.f32 1.0, %v3766_v11  ;;  %v2239_v12 = vsel %vm2238_vm4, %v2234_v33, %v1480_v59  ;;  %v1110_v38 = vmul.f32 %v4506_v46, %v4505_v49  ;;  %v2192_v39 = vsel %vm447_vm0, %v2184_v1, 0.0 }
 0x400   : > { %v2185_v13 = vmul.f32 %v4503_v21, %v2145_v23  ;;  %v1659_v26 = vrot.slane %v1658_v42, 1  ;;  %v1837_v58 = vrot.slane %v1836_v7, 2  ;;  %v2015_v0 = vrot.slane %v2014_v27, 4 }
 0x401   : > { %v4005_v54 = vmul.f32 %v4504_v40, %v3994_v17  ;;  %v1071_v60 = vadd.f32 %v1055_v41, %v3812_v34  ;;  %v954_v8 = vadd.f32 %v953_v15, %v4500_v6  ;;  %v1177_v32 = vsub.f32 1.0, %v3999_v24  ;;  %v1235_v23 = vpop.permute.xlu1 %1234  ;;  %v4510_v40 = vld [vmem:[#allocation76_spill] sm:$0xff] }
 0x402   : > { %v2193_v63 = vsel %vm447_vm0, %v2185_v13, 0.0  ;;  %v1660_v44 = vadd.f32 %v1659_v26, %v1658_v42  ;;  %v1838_v61 = vadd.f32 %v1837_v58, %v1836_v7  ;;  %v2016_v11 = vadd.f32 %v2015_v0, %v2014_v27  ;;  %v4508_v42 = vld [vmem:[#allocation78_spill] sm:$0xff]  ;;  %v4509_v7 = vld [vmem:[#allocation47_spill] sm:$0xff]  ;;  %v4511_v26 = vld [vmem:[#allocation21_spill] sm:$0xff] }
 0x403   : > { %v2194_v20 = vadd.f32 %v2193_v63, %v2192_v39  ;;  %v1111_v3 = vmul.f32 %v3507_v14, %v1071_v60  ;;  %v4507_v9 = vsub.f32 1.0, %v3846_v2  ;;  %v1139_v34 = vsel %vm447_vm0, %v1110_v38, 0.0  ;;  %v4512_v0 = vld [vmem:[#allocation63_spill] sm:$0xff] }
 0x404   : > { %v1839_v45 = vrot.slane %v1838_v61, 1  ;;  %v2017_v25 = vrot.slane %v2016_v11, 2  ;;  %v2244_v59 = vsel %vm2243_vm5, %v2239_v12, %v1660_v44  ;;  %v1290_v27 = vmul.f32 %v4509_v7, %v4508_v42 }
 0x405   : > { %v1187_v33 = vmul.f32 %v4507_v9, %v1071_v60  ;;  %v2195_v1 = vrot.slane %v2194_v20, 4  ;;  %v1140_v6 = vsel %vm447_vm0, %v1111_v3, 0.0  ;;  %v955_v2 = vrot.slane %v954_v8, 2  ;;  %v1415_v39 = vpop.permute.xlu1 %1414 }
 0x406   : > { %v1840_v29 = vadd.f32 %v1839_v45, %v1838_v61  ;;  %v2018_v21 = vadd.f32 %v2017_v25, %v2016_v11  ;;  %v1141_v13 = vadd.f32 %v1140_v6, %v1139_v34  ;;  %v4025_v58 = vmul.f32 %v4511_v26, %v4510_v40  ;;  %v4514_v61 = vld [vmem:[#allocation43_spill] sm:$0xff] }
 0x407   : > { %v1251_v15 = vadd.f32 %v1235_v23, %v1187_v33  ;;  %v2196_v14 = vadd.f32 %v2195_v1, %v2194_v20  ;;  %v4513_v12 = vsub.f32 1.0, %v3780_v62  ;;  %v1319_v44 = vsel %vm447_vm0, %v1290_v27, 0.0  ;;  %v4515_v11 = vld [vmem:[#allocation51_spill] sm:$0xff] }
 0x408   : > { %v2019_v46 = vrot.slane %v2018_v21, 1  ;;  %v1142_v38 = vrot.slane %v1141_v13, 4  ;;  %v2249_v60 = vsel %vm2248_vm6, %v2244_v59, %v1840_v29  ;;  %v1470_v20 = vmul.f32 %v4515_v11, %v4514_v61  ;;  %v4520_v11 = vld [vmem:[#allocation16_spill] sm:$0xff] }
 0x409   : > { %v1291_v41 = vmul.f32 %v4512_v0, %v1251_v15  ;;  %v1367_v49 = vmul.f32 %v4513_v12, %v1251_v15  ;;  %v2197_v63 = vrot.slane %v2196_v14, 2  ;;  %v4035_v62 = vadd.f32 %v955_v2, %v954_v8  ;;  %v1595_v6 = vpop.permute.xlu1 %1594  ;;  %v4518_v12 = vld [vmem:[#allocation59_spill] sm:$0xff] }
 0x40a   : > { %v1143_v33 = vadd.f32 %v1142_v38, %v1141_v13  ;;  %v2020_v25 = vadd.f32 %v2019_v46, %v2018_v21  ;;  %v1357_v23 = vsub.f32 1.0, %v4025_v58  ;;  %v4516_v59 = vsub.f32 1.0, %v3857_v52  ;;  %v4517_v21 = vld [vmem:[#allocation55_spill] sm:$0xff] }
 0x40b   : > { %v1320_v3 = vsel %vm447_vm0, %v1291_v41, 0.0  ;;  %v1431_v9 = vadd.f32 %v1415_v39, %v1367_v49  ;;  %v2198_v1 = vadd.f32 %v2197_v63, %v2196_v14  ;;  %v1499_v13 = vsel %vm447_vm0, %v1470_v20, 0.0  ;;  %v4521_v20 = vld [vmem:[#allocation22_spill] sm:$0xff] }
 0x40c   : > { %v1321_v45 = vadd.f32 %v1320_v3, %v1319_v44  ;;  %v1144_v7 = vrot.slane %v1143_v33, 2  ;;  %v2254_v29 = vsel %vm2253_vm7, %v2249_v60, %v2020_v25  ;;  %v1650_v14 = vmul.f32 %v4517_v21, %v3771_v47 }
 0x40d   : > { %v1471_v34 = vmul.f32 %v4451_v31, %v1431_v9  ;;  %v1547_v42 = vmul.f32 %v4516_v59, %v1431_v9  ;;  %v2199_v15 = vrot.slane %v2198_v1, 1  ;;  %v957_v52 = vrot.slane %v4035_v62, 1  ;;  %v1775_v44 = vpop.permute.xlu1 %1774 }
 0x40e   : > { %v1322_v27 = vrot.slane %v1321_v45, 4  ;;  %v1145_v26 = vadd.f32 %v1144_v7, %v1143_v33  ;;  %v1830_v49 = vmul.f32 %v4518_v12, %v3832_v37  ;;  %v4519_v38 = vsub.f32 1.0, %v3798_v48 }
 0x40f   : > { %v1500_v8 = vsel %vm447_vm0, %v1471_v34, 0.0  ;;  %v1611_v2 = vadd.f32 %v1595_v6, %v1547_v42  ;;  %v2200_v41 = vadd.f32 %v2199_v15, %v2198_v1  ;;  %v4055_v3 = vmul.f32 %v4521_v20, %v4520_v11  ;;  %v4522_v34 = vld [vmem:[#allocation39_spill] sm:$0xff] }
 0x410   : > { %v1323_v0 = vadd.f32 %v1322_v27, %v1321_v45  ;;  %v1501_v31 = vadd.f32 %v1500_v8, %v1499_v13  ;;  %v1146_v63 = vrot.slane %v1145_v26, 1  ;;  %v1679_v9 = vsel %vm447_vm0, %v1650_v14, 0.0 }
 0x411   : > { %v1651_v46 = vmul.f32 %v3450_v28, %v1611_v2  ;;  %v1727_v39 = vmul.f32 %v4519_v38, %v1611_v2  ;;  %v2259_v61 = vsel %vm2258_vm8, %v2254_v29, %v2200_v41  ;;  %v1859_v1 = vsel %vm447_vm0, %v1830_v49, 0.0  ;;  %v1955_v29 = vpop.permute.xlu0 %1954  ;;  %v1051_v21 = vpop.permute.xlu1 %1050 }
 0x412   : > { %v1324_v60 = vrot.slane %v1323_v0, 2  ;;  %v1502_v47 = vrot.slane %v1501_v31, 4  ;;  %2623 = vmatprep.mubr.msk.f32.mxu0 %vm447_vm0, %v2259_v61  ;;  %v1147_v28 = vadd.f32 %v1146_v63, %v1145_v26  ;;  %v2010_v59 = vmul.f32 %v4522_v34, %v3899_v22 }
 0x413   : > { %v1680_v33 = vsel %vm447_vm0, %v1651_v46, 0.0  ;;  %v1791_v37 = vadd.f32 %v1775_v44, %v1727_v39  ;;  %2624 = vmatmul.mubr.msk.f32.vlgmr.msra.gmra.mxu0 %vm447_vm0, %v3963_v43  ;;  %v4523_v43 = vld [vmem:[#allocation45_spill] sm:$0xff]  ;;  %v1069_v22 = vadd.f32 %v1051_v21, %v3979_v53 }
 0x414   : > { %v1325_v48 = vadd.f32 %v1324_v60, %v1323_v0  ;;  %v1503_v45 = vadd.f32 %v1502_v47, %v1501_v31  ;;  %v1681_v25 = vadd.f32 %v1680_v33, %v1679_v9  ;;  %v2232_v27 = vsel %vm2228_vm2, %v3837_v10, %v1147_v28  ;;  %v4524_v60 = vld [vmem:[#allocation48_spill] sm:$0xff]  ;;  %v4525_v28 = vld [vmem:[#allocation14_spill] sm:$0xff] }
 0x415   : > { %v1831_v42 = vmul.f32 %v4455_v19, %v1791_v37  ;;  %v1907_v7 = vmul.f32 %v1899_v55, %v1791_v37  ;;  %v1108_v14 = vmul.f32 %v4523_v43, %v3904_v30  ;;  %v1109_v0 = vmul.f32 %v4501_v56, %v1069_v22  ;;  %v1231_v39 = vpop.permute.xlu1 %1230 }
 0x416   : > { %v1326_v6 = vrot.slane %v1325_v48, 1  ;;  %v1504_v15 = vrot.slane %v1503_v45, 2  ;;  %v1682_v13 = vrot.slane %v1681_v25, 4  ;;  %v1185_v10 = vmul.f32 %v1177_v32, %v1069_v22 }
 0x417   : > { %v1860_v8 = vsel %vm447_vm0, %v1831_v42, 0.0  ;;  %v1971_v2 = vadd.f32 %v1955_v29, %v1907_v7  ;;  %v2039_v46 = vsel %vm447_vm0, %v2010_v59, 0.0  ;;  %v1130_v38 = vsel %vm447_vm0, %v1108_v14, 0.0  ;;  %v4527_v59 = vld [vmem:[#allocation50_spill] sm:$0xff] }
 0x418   : > { %v1327_v19 = vadd.f32 %v1326_v6, %v1325_v48  ;;  %v1505_v26 = vadd.f32 %v1504_v15, %v1503_v45  ;;  %v1683_v50 = vadd.f32 %v1682_v13, %v1681_v25  ;;  %v1861_v55 = vadd.f32 %v1860_v8, %v1859_v1  ;;  %v4526_v48 = vld [vmem:[#allocation23_spill] sm:$0xff] }
 0x419   : > { %v2011_v31 = vmul.f32 %v3564_v5, %v1971_v2  ;;  %v4080_v41 = vmul.f32 %v2079_v57, %v1971_v2  ;;  %v1131_v56 = vsel %vm447_vm0, %v1109_v0, 0.0  ;;  %v1537_v57 = vsub.f32 1.0, %v4055_v3 }
 0x41a   : > { %v2237_v30 = vsel %vm2233_vm3, %v2232_v27, %v1327_v19  ;;  %v1506_v12 = vrot.slane %v1505_v26, 1  ;;  %v1684_v53 = vrot.slane %v1683_v50, 2  ;;  %v1862_v49 = vrot.slane %v1861_v55, 4  ;;  %v1411_v34 = vpop.permute.xlu1 %1410 }
 0x41b   : > { %v2040_v24 = vsel %vm447_vm0, %v2011_v31, 0.0  ;;  %v1132_v51 = vadd.f32 %v1131_v56, %v1130_v38  ;;  %v1288_v47 = vmul.f32 %v4524_v60, %v3927_v4  ;;  %v1249_v44 = vadd.f32 %v1231_v39, %v1185_v10  ;;  %v4530_v38 = vld [vmem:[#allocation24_spill] sm:$0xff]  ;;  %v4532_v60 = vld [vmem:[#allocation25_spill] sm:$0xff] }
 0x41c   : > { %v1507_v32 = vadd.f32 %v1506_v12, %v1505_v26  ;;  %v1685_v5 = vadd.f32 %v1684_v53, %v1683_v50  ;;  %v1863_v63 = vadd.f32 %v1862_v49, %v1861_v55  ;;  %v2041_v61 = vadd.f32 %v2040_v24, %v2039_v46  ;;  %v4528_v55 = vld [vmem:[#allocation54_spill] sm:$0xff]  ;;  %v4529_v46 = vld [vmem:[#allocation79_spill] sm:$0xff] }
 0x41d   : > { %v1133_v37 = vrot.slane %v1132_v51, 4  ;;  %v1709_v45 = vmul.f32 %v4526_v48, %v4525_v28  ;;  %v1289_v25 = vmul.f32 %v4510_v40, %v1249_v44  ;;  %v1365_v1 = vmul.f32 %v1357_v23, %v1249_v44 }
 0x41e   : > { %v2242_v20 = vsel %vm2238_vm4, %v2237_v30, %v1507_v32  ;;  %v1686_v9 = vrot.slane %v1685_v5, 1  ;;  %v1864_v33 = vrot.slane %v1863_v63, 2  ;;  %v2042_v3 = vrot.slane %v2041_v61, 4 }
 0x41f   : > { %v1468_v4 = vmul.f32 %v4527_v59, %v3940_v36  ;;  %v1134_v27 = vadd.f32 %v1133_v37, %v1132_v51  ;;  %v1310_v6 = vsel %vm447_vm0, %v1288_v47, 0.0  ;;  %v1311_v15 = vsel %vm447_vm0, %v1289_v25, 0.0  ;;  %v1591_v50 = vpop.permute.xlu1 %1590  ;;  %v2182_v37 = vpop.permute.xlu0 %2181 }
 0x420   : > { %v1687_v42 = vadd.f32 %v1686_v9, %v1685_v5  ;;  %v1865_v7 = vadd.f32 %v1864_v33, %v1863_v63  ;;  %v1429_v29 = vadd.f32 %v1411_v34, %v1365_v1  ;;  %v2043_v13 = vadd.f32 %v2042_v3, %v2041_v61 }
 0x421   : > { %v1135_v43 = vrot.slane %v1134_v27, 2  ;;  %v1312_v40 = vadd.f32 %v1311_v15, %v1310_v6  ;;  %v1717_v23 = vsub.f32 1.0, %v1709_v45  ;;  %v1490_v36 = vsel %vm447_vm0, %v1468_v4, 0.0 }
 0x422   : > { %v1866_v21 = vrot.slane %v1865_v7, 1  ;;  %v2247_v58 = vsel %vm2243_vm5, %v2242_v20, %v1687_v42  ;;  %v1469_v14 = vmul.f32 %v4520_v11, %v1429_v29  ;;  %v1545_v8 = vmul.f32 %v1537_v57, %v1429_v29  ;;  %v4531_v57 = vld [vmem:[#allocation26_spill] sm:$0xff] }
 0x423   : > { %v2044_v22 = vrot.slane %v2043_v13, 2  ;;  %v1136_v19 = vadd.f32 %v1135_v43, %v1134_v27  ;;  %v1313_v26 = vrot.slane %v1312_v40, 4  ;;  %v1648_v0 = vmul.f32 %v4528_v55, %v3953_v16  ;;  %v4534_v43 = vld [vmem:[#allocation60_spill] sm:$0xff] }
 0x424   : > { %v1867_v2 = vadd.f32 %v1866_v21, %v1865_v7  ;;  %v1491_v10 = vsel %vm447_vm0, %v1469_v14, 0.0  ;;  %v1609_v31 = vadd.f32 %v1591_v50, %v1545_v8  ;;  %v1889_v56 = vmul.f32 %v4530_v38, %v4529_v46  ;;  %v1771_v20 = vpop.permute.xlu1 %1770 }
 0x425   : > { %v2045_v30 = vadd.f32 %v2044_v22, %v2043_v13  ;;  %v1137_v12 = vrot.slane %v1136_v19, 1  ;;  %v1314_v53 = vadd.f32 %v1313_v26, %v1312_v40  ;;  %v1492_v49 = vadd.f32 %v1491_v10, %v1490_v36 }
 0x426   : > { %v2252_v11 = vsel %vm2248_vm6, %v2247_v58, %v1867_v2  ;;  %v1649_v39 = vmul.f32 %v4525_v28, %v1609_v31  ;;  %v1725_v24 = vmul.f32 %v1717_v23, %v1609_v31  ;;  %v958_v16 = vadd.f32 %v957_v52, %v4035_v62  ;;  %v4533_v62 = vld [vmem:[#allocation56_spill] sm:$0xff] }
 0x427   : > { %v2046_v32 = vrot.slane %v2045_v30, 1  ;;  %v1138_v5 = vadd.f32 %v1137_v12, %v1136_v19  ;;  %v1315_v63 = vrot.slane %v1314_v53, 2  ;;  %v1493_v51 = vrot.slane %v1492_v49, 4 }
 0x428   : > { %v2069_v47 = vmul.f32 %v4532_v60, %v4531_v57  ;;  %v1670_v44 = vsel %vm447_vm0, %v1648_v0, 0.0  ;;  %v1671_v61 = vsel %vm447_vm0, %v1649_v39, 0.0  ;;  %v1897_v25 = vsub.f32 1.0, %v1889_v56 }
 0x429   : > { %v2047_v9 = vadd.f32 %v2046_v32, %v2045_v30  ;;  %v2231_v33 = vsel %vm2228_vm2, %v958_v16, %v1138_v5  ;;  %v1316_v28 = vadd.f32 %v1315_v63, %v1314_v53  ;;  %v1494_v48 = vadd.f32 %v1493_v51, %v1492_v49  ;;  %v1951_v13 = vpop.permute.xlu0 %1950  ;;  %v4535_v51 = vld [vmem:[#allocation66_spill] sm:$0xff] }
 0x42a   : > { %v1672_v45 = vadd.f32 %v1671_v61, %v1670_v44  ;;  %v1828_v52 = vmul.f32 %v4533_v62, %v3968_v18  ;;  %v1789_v1 = vadd.f32 %v1771_v20, %v1725_v24  ;;  %v2077_v27 = vsub.f32 1.0, %v2069_v47  ;;  %v4536_v20 = vld [vmem:[#allocation68_spill] sm:$0xff] }
 0x42b   : > { %v4121_v34 = vsel %vm2253_vm7, %v2252_v11, %v2047_v9  ;;  %v1317_v3 = vrot.slane %v1316_v28, 1  ;;  %v1495_v59 = vrot.slane %v1494_v48, 2  ;;  %v2008_v18 = vmul.f32 %v4534_v43, %v3994_v17 }
 0x42c   : > { %v1673_v4 = vrot.slane %v1672_v45, 4  ;;  %v1829_v42 = vmul.f32 %v4529_v46, %v1789_v1  ;;  %v1905_v7 = vmul.f32 %v1897_v25, %v1789_v1  ;;  %v1850_v21 = vsel %vm447_vm0, %v1828_v52, 0.0 }
 0x42d   : > { %v1318_v6 = vadd.f32 %v1317_v3, %v1316_v28  ;;  %v1496_v15 = vadd.f32 %v1495_v59, %v1494_v48  ;;  %v2030_v55 = vsel %vm447_vm0, %v2008_v18, 0.0 }
 0x42e   : > { %v1674_v29 = vadd.f32 %v1673_v4, %v1672_v45  ;;  %v1851_v40 = vsel %vm447_vm0, %v1829_v42, 0.0  ;;  %v1969_v58 = vadd.f32 %v1951_v13, %v1905_v7  ;;  %v2131_v10 = vpop.permute.xlu0 %2130 }
 0x42f   : > { %v1497_v23 = vrot.slane %v1496_v15, 1  ;;  %v1852_v8 = vadd.f32 %v1851_v40, %v1850_v21  ;;  %v2236_v22 = vsel %vm2233_vm3, %v2231_v33, %v1318_v6 }
 0x430   : > { %v1675_v14 = vrot.slane %v1674_v29, 2  ;;  %v2009_v36 = vmul.f32 %v4531_v57, %v1969_v58  ;;  %v2085_v2 = vmul.f32 %v2077_v27, %v1969_v58 }
 0x431   : > { %v1498_v19 = vadd.f32 %v1497_v23, %v1496_v15  ;;  %v1853_v50 = vrot.slane %v1852_v8, 4  ;;  %v2178_v46 = vpop.permute.xlu1 %2177 }
 0x432   : > { %v1676_v26 = vadd.f32 %v1675_v14, %v1674_v29  ;;  %v2031_v0 = vsel %vm447_vm0, %v2009_v36, 0.0  ;;  %v2149_v38 = vadd.f32 %v2131_v10, %v2085_v2  ;;  %v2135_v24 = vpop.permute.xlu0 %2134 }
 0x433   : > { %v1854_v31 = vadd.f32 %v1853_v50, %v1852_v8  ;;  %v2032_v30 = vadd.f32 %v2031_v0, %v2030_v55  ;;  %v2241_v12 = vsel %vm2238_vm4, %v2236_v22, %v1498_v19  ;;  %v2151_v60 = vadd.f32 %v2135_v24, %v4080_v41  ;;  %v2558_v22 = vld [vmem:[%s4176_s8] ss:$0 sm:$0xff] }
 0x434   : > { %v1677_v17 = vrot.slane %v1676_v26, 1  ;;  %v2189_v57 = vmul.f32 %v4535_v51, %v2149_v38 }
 0x435   : > { %v1855_v49 = vrot.slane %v1854_v31, 2  ;;  %v2033_v11 = vrot.slane %v2032_v30, 4  ;;  %v2129_v63 = vpop.permute.xlu1 %2128  ;;  %v2191_v25 = vmul.f32 %v2182_v37, %v2151_v60  ;;  %v2560_v60 = vld [vmem:[#allocation2] ss:$0 sm:$0xff] }
 0x436   : > { %v1678_v53 = vadd.f32 %v1677_v17, %v1676_v26  ;;  %v2148_v47 = vadd.f32 %v2129_v63, %v4005_v54  ;;  %v2211_v45 = vsel %vm447_vm0, %v2189_v57, 0.0  ;;  %v2274_v14 = vpop.permute.xlu0 %2273 }
 0x437   : > { %v1856_v56 = vadd.f32 %v1855_v49, %v1854_v31  ;;  %v2034_v39 = vadd.f32 %v2033_v11, %v2032_v30  ;;  %v2220_v4 = vsel %vm447_vm0, %v2191_v25, 0.0 }
 0x438   : > { %v2246_v32 = vsel %vm2243_vm5, %v2241_v12, %v1678_v53  ;;  %v2188_v9 = vmul.f32 %v4536_v20, %v2148_v47 }
 0x439   : > { %v1857_v16 = vrot.slane %v1856_v56, 1  ;;  %v2035_v5 = vrot.slane %v2034_v39, 2  ;;  %v2133_v28 = vpop.permute.xlu1 %2132 }
 0x43a   : > { %v2210_v62 = vsel %vm447_vm0, %v2188_v9, 0.0  ;;  %v2150_v52 = vadd.f32 %v2133_v28, %v3909_v35  ;;  %v2278_v53 = vpop.permute.xlu0 %2277 }
 0x43b   : > { %v1858_v44 = vadd.f32 %v1857_v16, %v1856_v56  ;;  %v2036_v61 = vadd.f32 %v2035_v5, %v2034_v39  ;;  %v2212_v1 = vadd.f32 %v2211_v45, %v2210_v62 }
 0x43c   : > { %v2190_v41 = vmul.f32 %v2178_v46, %v2150_v52 }
 0x43d   : > { %v2037_v33 = vrot.slane %v2036_v61, 1  ;;  %v2251_v48 = vsel %vm2248_vm6, %v2246_v32, %v1858_v44  ;;  %v2213_v59 = vrot.slane %v2212_v1, 4  ;;  %v2272_v2 = vpop.permute.xlu1 %2271 }
 0x43e   : > { %v2219_v42 = vsel %vm447_vm0, %v2190_v41, 0.0 }
 0x43f   : > { %v2038_v3 = vadd.f32 %v2037_v33, %v2036_v61  ;;  %v2214_v7 = vadd.f32 %v2213_v59, %v2212_v1  ;;  %v2221_v27 = vadd.f32 %v2220_v4, %v2219_v42 }
 0x441   : > { %v2256_v54 = vsel %vm2253_vm7, %v2251_v48, %v2038_v3  ;;  %v2215_v6 = vrot.slane %v2214_v7, 2  ;;  %v2222_v15 = vrot.slane %v2221_v27, 4  ;;  %v2276_v46 = vpop.permute.xlu1 %2275 }
 0x443   : > { %v2216_v29 = vadd.f32 %v2215_v6, %v2214_v7  ;;  %v2223_v37 = vadd.f32 %v2222_v15, %v2221_v27 }
 0x445   : > { %v2224_v13 = vrot.slane %v2223_v37, 2  ;;  %v2217_v21 = vrot.slane %v2216_v29, 1 }
 0x447   : > { %v2225_v43 = vadd.f32 %v2224_v13, %v2223_v37  ;;  %v2218_v35 = vadd.f32 %v2217_v21, %v2216_v29 }
 0x449   : > { %v2226_v18 = vrot.slane %v2225_v43, 1  ;;  %v2261_v40 = vsel %vm2258_vm8, %v2256_v54, %v2218_v35 }
 0x44a   : > { %2626 = vmatprep.mubr.msk.f32.mxu1 %vm447_vm0, %v2261_v40 }
 0x44b   : > { %v2227_v58 = vadd.f32 %v2226_v18, %v2225_v43 }
 0x44d   : > { %v2262_v23 = vsel %vm2258_vm8, %v4121_v34, %v2227_v58  ;;  %v2559_v34 = vld [vmem:[%s4177_s9] ss:$0 sm:$0xff] }
 0x44e   : > { %2627 = vmatmul.mubr.msk.f32.vlgmr.msra.gmra.mxu1 %vm447_vm0, %v2262_v23 }
 0x4d3   : > { %v2625_v8 = vpop.f32.mrf.mxu0 }
 0x4d4   : > { %v2367_v36 = vadd.f32 %v2625_v8, %v2274_v14 }
 0x4d5   : > { %v2361_v19 = vpop.f32.mrf.mxu0 }
 0x4d6   : > { %v2388_v26 = vadd.f32 %v2558_v22, %v2367_v36  ;;  %v2362_v50 = vadd.f32 %v2361_v19, %v2272_v2 }
 0x4d8   : > { %2750 = vtanh.f32 %v2388_v26  ;;  %v2387_v55 = vadd.f32 %v2558_v22, %v2362_v50 }
 0x4da   : > { %2752 = vtanh.f32 %v2387_v55 }
 0x4e5   : > { %v2751_v0 = vpop.eup %2750 }
 0x4e6   : > { %v2403_v10 = vmul.f32 %v2751_v0, %v2559_v34 }
 0x4e7   : > { %v2753_v17 = vpop.eup %2752 }
 0x4e8   : > { %v2409_v31 = vsel %vm447_vm0, %v2403_v10, 0.0  ;;  %v2402_v30 = vmul.f32 %v2753_v17, %v2559_v34 }
 0x4e9   : > { %2410 = vadd.xlane.f32.xlu0 %v2409_v31 }
 0x4ea   : > { %v2406_v12 = vsel %vm447_vm0, %v2402_v30, 0.0 }
 0x4eb   : > { %2407 = vadd.xlane.f32.xlu1 %v2406_v12 }
 0x50e   : > { %v2628_v49 = vpop.f32.mrf.mxu1 }
 0x50f   : > { %v2377_v11 = vadd.f32 %v2628_v49, %v2278_v53 }
 0x510   : > { %v2371_v38 = vpop.f32.mrf.mxu1 }
 0x511   : > { %v2390_v56 = vadd.f32 %v2558_v22, %v2377_v11  ;;  %v2372_v39 = vadd.f32 %v2371_v38, %v2276_v46 }
 0x513   : > { %2754 = vtanh.f32 %v2390_v56  ;;  %v2389_v24 = vadd.f32 %v2558_v22, %v2372_v39 }
 0x515   : > { %2756 = vtanh.f32 %v2389_v24 }
 0x520   : > { %v2755_v32 = vpop.eup %2754 }
 0x521   : > { %v2405_v16 = vmul.f32 %v2755_v32, %v2559_v34 }
 0x522   : > { %v2757_v5 = vpop.eup %2756 }
 0x523   : > { %v2415_v63 = vsel %vm447_vm0, %v2405_v16, 0.0  ;;  %v2404_v51 = vmul.f32 %v2757_v5, %v2559_v34 }
 0x524   : > { %2416 = vadd.xlane.f32.xlu1 %v2415_v63 }
 0x525   : > { %v2412_v57 = vsel %vm447_vm0, %v2404_v51, 0.0 }
 0x526   : > { %2413 = vadd.xlane.f32.xlu0 %v2412_v57 }
 0x572   : > { %v2411_v61 = vpop.xlane.xlu0 %2410 }
 0x573   : > { %v2426_v20 = vadd.f32 %v2560_v60, %v2411_v61 }
 0x574   : > { %v2408_v47 = vpop.xlane.xlu1 %2407 }
 0x575   : > { %v2425_v44 = vadd.f32 %v2560_v60, %v2408_v47 }
 0x577   : > { %2429 = vxpose.xlu0.b32.start [1/4] (short) (narrow) %v2425_v44, 8 }
 0x57b   : > { %2430 = vxpose.xlu0.b32.cont [2/4] (short) (narrow) %v2426_v20, 8 }
 0x5ad   : > { %v2417_v28 = vpop.xlane.xlu1 %2416 }
 0x5ae   : > { %v2428_v48 = vadd.f32 %v2560_v60, %v2417_v28 }
 0x5af   : > { %v2414_v9 = vpop.xlane.xlu0 %2413 }
 0x5b0   : > { %v2427_v33 = vadd.f32 %v2560_v60, %v2414_v9 }
 0x5b2   : > { %2431 = vxpose.xlu0.b32.cont [3/4] (short) (narrow) %v2427_v33, 8 }
 0x5b6   : > { %2432 = vxpose.xlu0.b32.end [4/4] (short) (narrow) %v2428_v48, 8 }
 0x626   : > { %v2445_v45 = vpop.trf.xlu0 }
 0x627   : > { %2462 = vst.msk [vmem:[%s430_s14] sm:$0x1] %vm2461_vm9, %v2445_v45 }
 0x628 PF: > { %s23_s19 = sadd.s32 1, %s2764_s19  }
 0x629   : > { %p20_p5 = scmp.ge.s32.totalorder %s23_s19, 4  }
 0x62b   :  { %22 = sbr.rel (!%p20_p5) target bundleno = 3 (0x3), region = 100 }

</bundles_post_ra>
